<compile_context>
chip_gen: v7x
topology: tpu7x:2x2x1
jax: 0.10.0
libtpu: 0.0.40
codegen_flags: <defaults>
</compile_context>

<pallas_src>
import functools

import jax
import jax.numpy as jnp
from jax import lax
from jax.experimental import pallas as pl
from jax.experimental.pallas import tpu as pltpu


def _cnnrnn_kernel(x_ref,          # (P*Bp, m)   time-major, batch-padded, flattened
                   wi_ref,         # (m, 3*Hp)   (adj*mask) @ W_i{r|z|n}^T, lane-padded per gate
                   bi_ref,         # (1, 3*Hp)   folded gate biases (r,z: input+hidden; n: input)
                   wh_ref,         # (Hp, 3*Hp)  W_h{r|z|n}^T, lane-padded, bf16
                   bhn_ref,        # (1, Hp)     hidden bias of n gate (scaled by r in the loop)
                   wl_ref,         # (Hp, m)     output linear weight (rows padded with zeros)
                   bl_ref,         # (1, m)
                   out_ref,        # (Bp, m)
                   gi_scr,         # (P*Bp, 3*Hp) VMEM scratch for hoisted input projections
                   *, n_steps, b_tile):
    Hp = bhn_ref.shape[1]

    # --- hoisted fused input projection: one MXU dot, one bias add, one bulk store ---
    gi_scr[...] = (
        jnp.dot(x_ref[...], wi_ref[...], preferred_element_type=jnp.float32)
        + bi_ref[...]
    )

    wh = wh_ref[...]          # (Hp, 3*Hp) bf16, loop-invariant
    bhn = bhn_ref[...]        # (1, Hp)

    # --- serial GRU recurrence: one bf16 MXU dot + elementwise per step ---
    def step(t, h):
        row = pl.multiple_of(t * b_tile, b_tile)
        gi = gi_scr[pl.ds(row, b_tile), :]                       # aligned whole-tile load
        gh = jnp.dot(h.astype(jnp.bfloat16), wh,
                     preferred_element_type=jnp.float32)         # (Bp, 3*Hp)
        r = jax.nn.sigmoid(gi[:, 0:Hp] + gh[:, 0:Hp])            # whole-vreg lane slices
        z = jax.nn.sigmoid(gi[:, Hp:2 * Hp] + gh[:, Hp:2 * Hp])
        n = jnp.tanh(gi[:, 2 * Hp:3 * Hp] + r * (gh[:, 2 * Hp:3 * Hp] + bhn))
        return (1.0 - z) * n + z * h

    h0 = jnp.zeros((b_tile, Hp), jnp.float32)
    h = lax.fori_loop(0, n_steps, step, h0, unroll=True)

    # Dropout: identity in eval mode.
    res = jnp.dot(h, wl_ref[...], preferred_element_type=jnp.float32) + bl_ref[...]
    out_ref[...] = jax.nn.sigmoid(res)            # args.output_fun == 'sigmoid'


def cnnrnn_forward(x, adj, mask_mat, w_ih, w_hh, b_ih, b_hh, w_lin, b_lin):
    """x: (B, P, m) sequence input, matching the PyTorch forward (eval mode)."""
    B, P, m = x.shape
    H = w_hh.shape[1]
    assert w_ih.shape == (3 * H, m) and w_hh.shape == (3 * H, H)
    f32 = jnp.float32

    Bp = ((B + 7) // 8) * 8            # pad batch to a full sublane tile
    Hp = ((H + 127) // 128) * 128      # pad each gate to a 128-lane boundary

    # time-major, batch-padded, flattened sequence: (P*Bp, m)
    x_tm = jnp.transpose(x, (1, 0, 2)).astype(f32)                  # (P, B, m)
    x_tm = jnp.pad(x_tm, ((0, 0), (0, Bp - B), (0, 0)))             # (P, Bp, m)
    x_tm = x_tm.reshape(P * Bp, m)

    masked = (adj * mask_mat).astype(f32)                           # (m, m)

    w_ir, w_iz, w_in = (w_ih[g * H:(g + 1) * H, :].astype(f32) for g in range(3))
    w_hr, w_hz, w_hn = (w_hh[g * H:(g + 1) * H, :].astype(f32) for g in range(3))
    b_ir, b_iz, b_in = (b_ih[g * H:(g + 1) * H].astype(f32) for g in range(3))
    b_hr, b_hz, b_hn = (b_hh[g * H:(g + 1) * H].astype(f32) for g in range(3))

    def pad_cols(w):                 # (rows, H) -> (rows, Hp), zero-fill
        return jnp.pad(w, ((0, 0), (0, Hp - H)))

    def pad_sq(w):                   # (H, H) -> (Hp, Hp), zero-fill
        return jnp.pad(w, ((0, Hp - H), (0, Hp - H)))

    def pad_vec(b):                  # (H,) -> (Hp,), zero-fill
        return jnp.pad(b, (0, Hp - H))

    # Fused, lane-padded input-side weights (masked adjacency folded in) + biases.
    wi = jnp.concatenate([pad_cols(masked @ w_ir.T),
                          pad_cols(masked @ w_iz.T),
                          pad_cols(masked @ w_in.T)], axis=1)       # (m, 3*Hp)
    bi = jnp.concatenate([pad_vec(b_ir + b_hr),                     # r: both biases fold
                          pad_vec(b_iz + b_hz),                     # z: both biases fold
                          pad_vec(b_in)]).reshape(1, 3 * Hp)        # n: input bias only

    # Fused, lane-padded hidden-side weights (bf16 for the serial-chain MXU dot).
    wh = jnp.concatenate([pad_sq(w_hr.T), pad_sq(w_hz.T), pad_sq(w_hn.T)],
                         axis=1).astype(jnp.bfloat16)               # (Hp, 3*Hp)
    bhn = pad_vec(b_hn).reshape(1, Hp)                              # scaled by r in-loop

    wl = jnp.pad(jnp.transpose(w_lin).astype(f32), ((0, Hp - H), (0, 0)))  # (Hp, m)
    bl = b_lin.reshape(1, m).astype(f32)

    kernel = functools.partial(_cnnrnn_kernel, n_steps=P, b_tile=Bp)

    # Footprint is <1 MiB at these sizes, so one invocation with full-array blocks.
    # If B/P/m scale (esp. on v7x's 64 MiB VMEM / 2 TCs), tile over B with a
    # 'parallel' grid axis and re-budget the (P*Bp, 3*Hp) scratch.
    out_padded = pl.pallas_call(
        kernel,
        out_shape=jax.ShapeDtypeStruct((Bp, m), f32),
        scratch_shapes=[pltpu.VMEM((P * Bp, 3 * Hp), f32)],
        compiler_params=pltpu.CompilerParams(
            vmem_limit_bytes=32 * 1024 * 1024),
    )(x_tm, wi, bi, wh, bhn, wl, bl)

    return out_padded[:B, :]


def _reference(x, adj, mask_mat, w_ih, w_hh, b_ih, b_hh, w_lin, b_lin):
    """Pure-JAX f32 reference of the PyTorch forward (eval mode)."""
    B, P, m = x.shape
    H = w_hh.shape[1]
    xm = x @ (adj * mask_mat)                        # (B, P, m)
    h = jnp.zeros((B, H), jnp.float32)
    for t in range(P):
        gi = xm[:, t, :] @ w_ih.T + b_ih
        gh = h @ w_hh.T + b_hh
        r = jax.nn.sigmoid(gi[:, 0:H] + gh[:, 0:H])
        z = jax.nn.sigmoid(gi[:, H:2 * H] + gh[:, H:2 * H])
        n = jnp.tanh(gi[:, 2 * H:3 * H] + r * gh[:, 2 * H:3 * H])
        h = (1.0 - z) * n + z * h
    return jax.nn.sigmoid(h @ w_lin.T + b_lin)


if __name__ == "__main__":
    # small shapes: batch=2, window P=8, series m=16, hidRNN=32
    B, P, m, H = 2, 8, 16, 32

    key = jax.random.PRNGKey(0)
    ks = jax.random.split(key, 9)
    k_gru = 1.0 / jnp.sqrt(jnp.float32(H))

    x = jax.random.normal(ks[0], (B, P, m), jnp.float32)
    adj = (jax.random.uniform(ks[1], (m, m)) > 0.5).astype(jnp.float32)
    mask_mat = jax.random.normal(ks[2], (m, m), jnp.float32) * 0.1
    w_ih = jax.random.uniform(ks[3], (3 * H, m), jnp.float32, -k_gru, k_gru)
    w_hh = jax.random.uniform(ks[4], (3 * H, H), jnp.float32, -k_gru, k_gru)
    b_ih = jax.random.uniform(ks[5], (3 * H,), jnp.float32, -k_gru, k_gru)
    b_hh = jax.random.uniform(ks[6], (3 * H,), jnp.float32, -k_gru, k_gru)
    w_lin = jax.random.uniform(ks[7], (m, H), jnp.float32, -k_gru, k_gru)
    b_lin = jax.random.uniform(ks[8], (m,), jnp.float32, -k_gru, k_gru)

    out = cnnrnn_forward(x, adj, mask_mat, w_ih, w_hh, b_ih, b_hh, w_lin, b_lin)
    out = jax.block_until_ready(out)

    ref = _reference(x, adj, mask_mat, w_ih, w_hh, b_ih, b_hh, w_lin, b_lin)
    assert out.shape == (B, m)
    # Tolerance loosened vs. the all-f32 version: the per-step hidden projection
    # runs with bf16 MXU operands (f32 accumulation).
    assert jnp.allclose(out, ref, atol=2e-2, rtol=2e-2), (
        float(jnp.max(jnp.abs(out - ref))))

    print("KERNEL_OK")
</pallas_src>

<mosaic_0001>
module attributes {stable_mosaic.version = 11 : i64} {
  func.func @_cnnrnn_kernel(%arg0: memref<64x16xf32, #tpu.memory_space<vmem>>, %arg1: memref<16x384xf32, #tpu.memory_space<vmem>>, %arg2: memref<1x384xf32, #tpu.memory_space<vmem>>, %arg3: memref<128x384xbf16, #tpu.memory_space<vmem>>, %arg4: memref<1x128xf32, #tpu.memory_space<vmem>>, %arg5: memref<128x16xf32, #tpu.memory_space<vmem>>, %arg6: memref<1x16xf32, #tpu.memory_space<vmem>>, %arg7: memref<8x16xf32, #tpu.memory_space<vmem>>, %arg8: memref<64x384xf32, #tpu.memory_space<vmem>>) attributes {dimension_semantics = [], scalar_prefetch = 0 : i64, scratch_operands = 1 : i64, tpu.core_type = #tpu.core_type<tc>} {
    %c0 = arith.constant 0 : index
    %c0_0 = arith.constant 0 : index
    %0 = vector.load %arg0[%c0, %c0_0] : memref<64x16xf32, #tpu.memory_space<vmem>>, vector<64x16xf32>
    %c0_1 = arith.constant 0 : index
    %c0_2 = arith.constant 0 : index
    %1 = vector.load %arg1[%c0_1, %c0_2] : memref<16x384xf32, #tpu.memory_space<vmem>>, vector<16x384xf32>
    %cst = arith.constant dense<0.000000e+00> : vector<64x384xf32>
    %2 = tpu.matmul %0, %1, %cst {dimension_numbers = #tpu.dot_dimension_numbers<[1], [0], [0], [1], [0, 0, 1, 1], [], []>} : vector<64x16xf32>, vector<16x384xf32>, vector<64x384xf32> -> vector<64x384xf32>
    %c0_3 = arith.constant 0 : index
    %c0_4 = arith.constant 0 : index
    %3 = vector.load %arg2[%c0_3, %c0_4] : memref<1x384xf32, #tpu.memory_space<vmem>>, vector<1x384xf32>
    %4 = vector.broadcast %3 : vector<1x384xf32> to vector<64x384xf32>
    %5 = arith.addf %2, %4 : vector<64x384xf32>
    %c0_5 = arith.constant 0 : index
    %c0_6 = arith.constant 0 : index
    %6 = vector.load %arg8[%c0_5, %c0_6] : memref<64x384xf32, #tpu.memory_space<vmem>>, vector<64x384xf32>
    tpu.vector_store %arg8[%c0_5, %c0_6], %5 {strides = array<i32>} : memref<64x384xf32, #tpu.memory_space<vmem>>, vector<64x384xf32>,
    %c0_7 = arith.constant 0 : index
    %c0_8 = arith.constant 0 : index
    %7 = vector.load %arg3[%c0_7, %c0_8] : memref<128x384xbf16, #tpu.memory_space<vmem>>, vector<128x384xbf16>
    %c0_9 = arith.constant 0 : index
    %c0_10 = arith.constant 0 : index
    %8 = vector.load %arg4[%c0_9, %c0_10] : memref<1x128xf32, #tpu.memory_space<vmem>>, vector<1x128xf32>
    %cst_11 = arith.constant 0.000000e+00 : f32
    %9 = vector.broadcast %cst_11 : f32 to vector<8x128xf32>
    %c0_i32 = arith.constant 0 : i32
    %c8_i32 = arith.constant 8 : i32
    %10 = arith.muli %c0_i32, %c8_i32 : i32
    %11 = tpu.assume_multiple %10, 8 : i32
    %12 = arith.index_cast %11 : i32 to index
    %c0_12 = arith.constant 0 : index
    %13 = vector.load %arg8[%12, %c0_12] : memref<64x384xf32, #tpu.memory_space<vmem>>, vector<8x384xf32>
    %14 = arith.truncf %9 : vector<8x128xf32> to vector<8x128xbf16>
    %cst_13 = arith.constant dense<0.000000e+00> : vector<8x384xf32>
    %15 = tpu.matmul %14, %7, %cst_13 {dimension_numbers = #tpu.dot_dimension_numbers<[1], [0], [0], [1], [0, 0, 1, 1], [], []>} : vector<8x128xbf16>, vector<128x384xbf16>, vector<8x384xf32> -> vector<8x384xf32>
    %16 = vector.extract_strided_slice %13 {offsets = [0, 0], sizes = [8, 128], strides = [1, 1]} : vector<8x384xf32> to vector<8x128xf32>
    %17 = vector.extract_strided_slice %15 {offsets = [0, 0], sizes = [8, 128], strides = [1, 1]} : vector<8x384xf32> to vector<8x128xf32>
    %18 = arith.addf %16, %17 : vector<8x128xf32>
    %19 = arith.negf %18 : vector<8x128xf32>
    %20 = math.exp %19 : vector<8x128xf32>
    %cst_14 = arith.constant 1.000000e+00 : f32
    %21 = vector.broadcast %cst_14 : f32 to vector<8x128xf32>
    %22 = arith.addf %21, %20 : vector<8x128xf32>
    %23 = arith.divf %21, %22 : vector<8x128xf32>
    %24 = vector.extract_strided_slice %13 {offsets = [0, 128], sizes = [8, 128], strides = [1, 1]} : vector<8x384xf32> to vector<8x128xf32>
    %25 = vector.extract_strided_slice %15 {offsets = [0, 128], sizes = [8, 128], strides = [1, 1]} : vector<8x384xf32> to vector<8x128xf32>
    %26 = arith.addf %24, %25 : vector<8x128xf32>
    %27 = arith.negf %26 : vector<8x128xf32>
    %28 = math.exp %27 : vector<8x128xf32>
    %cst_15 = arith.constant 1.000000e+00 : f32
    %29 = vector.broadcast %cst_15 : f32 to vector<8x128xf32>
    %30 = arith.addf %29, %28 : vector<8x128xf32>
    %31 = arith.divf %29, %30 : vector<8x128xf32>
    %32 = vector.extract_strided_slice %13 {offsets = [0, 256], sizes = [8, 128], strides = [1, 1]} : vector<8x384xf32> to vector<8x128xf32>
    %33 = vector.extract_strided_slice %15 {offsets = [0, 256], sizes = [8, 128], strides = [1, 1]} : vector<8x384xf32> to vector<8x128xf32>
    %34 = vector.broadcast %8 : vector<1x128xf32> to vector<8x128xf32>
    %35 = arith.addf %33, %34 : vector<8x128xf32>
    %36 = arith.mulf %23, %35 : vector<8x128xf32>
    %37 = arith.addf %32, %36 : vector<8x128xf32>
    %38 = math.tanh %37 : vector<8x128xf32>
    %cst_16 = arith.constant 1.000000e+00 : f32
    %39 = vector.broadcast %cst_16 : f32 to vector<8x128xf32>
    %40 = arith.subf %39, %31 : vector<8x128xf32>
    %41 = arith.mulf %40, %38 : vector<8x128xf32>
    %42 = arith.mulf %31, %9 : vector<8x128xf32>
    %43 = arith.addf %41, %42 : vector<8x128xf32>
    %c1_i32 = arith.constant 1 : i32
    %c8_i32_17 = arith.constant 8 : i32
    %44 = arith.muli %c1_i32, %c8_i32_17 : i32
    %45 = tpu.assume_multiple %44, 8 : i32
    %46 = arith.index_cast %45 : i32 to index
    %c0_18 = arith.constant 0 : index
    %47 = vector.load %arg8[%46, %c0_18] : memref<64x384xf32, #tpu.memory_space<vmem>>, vector<8x384xf32>
    %48 = arith.truncf %43 : vector<8x128xf32> to vector<8x128xbf16>
    %cst_19 = arith.constant dense<0.000000e+00> : vector<8x384xf32>
    %49 = tpu.matmul %48, %7, %cst_19 {dimension_numbers = #tpu.dot_dimension_numbers<[1], [0], [0], [1], [0, 0, 1, 1], [], []>} : vector<8x128xbf16>, vector<128x384xbf16>, vector<8x384xf32> -> vector<8x384xf32>
    %50 = vector.extract_strided_slice %47 {offsets = [0, 0], sizes = [8, 128], strides = [1, 1]} : vector<8x384xf32> to vector<8x128xf32>
    %51 = vector.extract_strided_slice %49 {offsets = [0, 0], sizes = [8, 128], strides = [1, 1]} : vector<8x384xf32> to vector<8x128xf32>
    %52 = arith.addf %50, %51 : vector<8x128xf32>
    %53 = arith.negf %52 : vector<8x128xf32>
    %54 = math.exp %53 : vector<8x128xf32>
    %cst_20 = arith.constant 1.000000e+00 : f32
    %55 = vector.broadcast %cst_20 : f32 to vector<8x128xf32>
    %56 = arith.addf %55, %54 : vector<8x128xf32>
    %57 = arith.divf %55, %56 : vector<8x128xf32>
    %58 = vector.extract_strided_slice %47 {offsets = [0, 128], sizes = [8, 128], strides = [1, 1]} : vector<8x384xf32> to vector<8x128xf32>
    %59 = vector.extract_strided_slice %49 {offsets = [0, 128], sizes = [8, 128], strides = [1, 1]} : vector<8x384xf32> to vector<8x128xf32>
    %60 = arith.addf %58, %59 : vector<8x128xf32>
    %61 = arith.negf %60 : vector<8x128xf32>
    %62 = math.exp %61 : vector<8x128xf32>
    %cst_21 = arith.constant 1.000000e+00 : f32
    %63 = vector.broadcast %cst_21 : f32 to vector<8x128xf32>
    %64 = arith.addf %63, %62 : vector<8x128xf32>
    %65 = arith.divf %63, %64 : vector<8x128xf32>
    %66 = vector.extract_strided_slice %47 {offsets = [0, 256], sizes = [8, 128], strides = [1, 1]} : vector<8x384xf32> to vector<8x128xf32>
    %67 = vector.extract_strided_slice %49 {offsets = [0, 256], sizes = [8, 128], strides = [1, 1]} : vector<8x384xf32> to vector<8x128xf32>
    %68 = vector.broadcast %8 : vector<1x128xf32> to vector<8x128xf32>
    %69 = arith.addf %67, %68 : vector<8x128xf32>
    %70 = arith.mulf %57, %69 : vector<8x128xf32>
    %71 = arith.addf %66, %70 : vector<8x128xf32>
    %72 = math.tanh %71 : vector<8x128xf32>
    %cst_22 = arith.constant 1.000000e+00 : f32
    %73 = vector.broadcast %cst_22 : f32 to vector<8x128xf32>
    %74 = arith.subf %73, %65 : vector<8x128xf32>
    %75 = arith.mulf %74, %72 : vector<8x128xf32>
    %76 = arith.mulf %65, %43 : vector<8x128xf32>
    %77 = arith.addf %75, %76 : vector<8x128xf32>
    %c2_i32 = arith.constant 2 : i32
    %c8_i32_23 = arith.constant 8 : i32
    %78 = arith.muli %c2_i32, %c8_i32_23 : i32
    %79 = tpu.assume_multiple %78, 8 : i32
    %80 = arith.index_cast %79 : i32 to index
    %c0_24 = arith.constant 0 : index
    %81 = vector.load %arg8[%80, %c0_24] : memref<64x384xf32, #tpu.memory_space<vmem>>, vector<8x384xf32>
    %82 = arith.truncf %77 : vector<8x128xf32> to vector<8x128xbf16>
    %cst_25 = arith.constant dense<0.000000e+00> : vector<8x384xf32>
    %83 = tpu.matmul %82, %7, %cst_25 {dimension_numbers = #tpu.dot_dimension_numbers<[1], [0], [0], [1], [0, 0, 1, 1], [], []>} : vector<8x128xbf16>, vector<128x384xbf16>, vector<8x384xf32> -> vector<8x384xf32>
    %84 = vector.extract_strided_slice %81 {offsets = [0, 0], sizes = [8, 128], strides = [1, 1]} : vector<8x384xf32> to vector<8x128xf32>
    %85 = vector.extract_strided_slice %83 {offsets = [0, 0], sizes = [8, 128], strides = [1, 1]} : vector<8x384xf32> to vector<8x128xf32>
    %86 = arith.addf %84, %85 : vector<8x128xf32>
    %87 = arith.negf %86 : vector<8x128xf32>
    %88 = math.exp %87 : vector<8x128xf32>
    %cst_26 = arith.constant 1.000000e+00 : f32
    %89 = vector.broadcast %cst_26 : f32 to vector<8x128xf32>
    %90 = arith.addf %89, %88 : vector<8x128xf32>
    %91 = arith.divf %89, %90 : vector<8x128xf32>
    %92 = vector.extract_strided_slice %81 {offsets = [0, 128], sizes = [8, 128], strides = [1, 1]} : vector<8x384xf32> to vector<8x128xf32>
    %93 = vector.extract_strided_slice %83 {offsets = [0, 128], sizes = [8, 128], strides = [1, 1]} : vector<8x384xf32> to vector<8x128xf32>
    %94 = arith.addf %92, %93 : vector<8x128xf32>
    %95 = arith.negf %94 : vector<8x128xf32>
    %96 = math.exp %95 : vector<8x128xf32>
    %cst_27 = arith.constant 1.000000e+00 : f32
    %97 = vector.broadcast %cst_27 : f32 to vector<8x128xf32>
    %98 = arith.addf %97, %96 : vector<8x128xf32>
    %99 = arith.divf %97, %98 : vector<8x128xf32>
    %100 = vector.extract_strided_slice %81 {offsets = [0, 256], sizes = [8, 128], strides = [1, 1]} : vector<8x384xf32> to vector<8x128xf32>
    %101 = vector.extract_strided_slice %83 {offsets = [0, 256], sizes = [8, 128], strides = [1, 1]} : vector<8x384xf32> to vector<8x128xf32>
    %102 = vector.broadcast %8 : vector<1x128xf32> to vector<8x128xf32>
    %103 = arith.addf %101, %102 : vector<8x128xf32>
    %104 = arith.mulf %91, %103 : vector<8x128xf32>
    %105 = arith.addf %100, %104 : vector<8x128xf32>
    %106 = math.tanh %105 : vector<8x128xf32>
    %cst_28 = arith.constant 1.000000e+00 : f32
    %107 = vector.broadcast %cst_28 : f32 to vector<8x128xf32>
    %108 = arith.subf %107, %99 : vector<8x128xf32>
    %109 = arith.mulf %108, %106 : vector<8x128xf32>
    %110 = arith.mulf %99, %77 : vector<8x128xf32>
    %111 = arith.addf %109, %110 : vector<8x128xf32>
    %c3_i32 = arith.constant 3 : i32
    %c8_i32_29 = arith.constant 8 : i32
    %112 = arith.muli %c3_i32, %c8_i32_29 : i32
    %113 = tpu.assume_multiple %112, 8 : i32
    %114 = arith.index_cast %113 : i32 to index
    %c0_30 = arith.constant 0 : index
    %115 = vector.load %arg8[%114, %c0_30] : memref<64x384xf32, #tpu.memory_space<vmem>>, vector<8x384xf32>
    %116 = arith.truncf %111 : vector<8x128xf32> to vector<8x128xbf16>
    %cst_31 = arith.constant dense<0.000000e+00> : vector<8x384xf32>
    %117 = tpu.matmul %116, %7, %cst_31 {dimension_numbers = #tpu.dot_dimension_numbers<[1], [0], [0], [1], [0, 0, 1, 1], [], []>} : vector<8x128xbf16>, vector<128x384xbf16>, vector<8x384xf32> -> vector<8x384xf32>
    %118 = vector.extract_strided_slice %115 {offsets = [0, 0], sizes = [8, 128], strides = [1, 1]} : vector<8x384xf32> to vector<8x128xf32>
    %119 = vector.extract_strided_slice %117 {offsets = [0, 0], sizes = [8, 128], strides = [1, 1]} : vector<8x384xf32> to vector<8x128xf32>
    %120 = arith.addf %118, %119 : vector<8x128xf32>
    %121 = arith.negf %120 : vector<8x128xf32>
    %122 = math.exp %121 : vector<8x128xf32>
    %cst_32 = arith.constant 1.000000e+00 : f32
    %123 = vector.broadcast %cst_32 : f32 to vector<8x128xf32>
    %124 = arith.addf %123, %122 : vector<8x128xf32>
    %125 = arith.divf %123, %124 : vector<8x128xf32>
    %126 = vector.extract_strided_slice %115 {offsets = [0, 128], sizes = [8, 128], strides = [1, 1]} : vector<8x384xf32> to vector<8x128xf32>
    %127 = vector.extract_strided_slice %117 {offsets = [0, 128], sizes = [8, 128], strides = [1, 1]} : vector<8x384xf32> to vector<8x128xf32>
    %128 = arith.addf %126, %127 : vector<8x128xf32>
    %129 = arith.negf %128 : vector<8x128xf32>
    %130 = math.exp %129 : vector<8x128xf32>
    %cst_33 = arith.constant 1.000000e+00 : f32
    %131 = vector.broadcast %cst_33 : f32 to vector<8x128xf32>
    %132 = arith.addf %131, %130 : vector<8x128xf32>
    %133 = arith.divf %131, %132 : vector<8x128xf32>
    %134 = vector.extract_strided_slice %115 {offsets = [0, 256], sizes = [8, 128], strides = [1, 1]} : vector<8x384xf32> to vector<8x128xf32>
    %135 = vector.extract_strided_slice %117 {offsets = [0, 256], sizes = [8, 128], strides = [1, 1]} : vector<8x384xf32> to vector<8x128xf32>
    %136 = vector.broadcast %8 : vector<1x128xf32> to vector<8x128xf32>
    %137 = arith.addf %135, %136 : vector<8x128xf32>
    %138 = arith.mulf %125, %137 : vector<8x128xf32>
    %139 = arith.addf %134, %138 : vector<8x128xf32>
    %140 = math.tanh %139 : vector<8x128xf32>
    %cst_34 = arith.constant 1.000000e+00 : f32
    %141 = vector.broadcast %cst_34 : f32 to vector<8x128xf32>
    %142 = arith.subf %141, %133 : vector<8x128xf32>
    %143 = arith.mulf %142, %140 : vector<8x128xf32>
    %144 = arith.mulf %133, %111 : vector<8x128xf32>
    %145 = arith.addf %143, %144 : vector<8x128xf32>
    %c4_i32 = arith.constant 4 : i32
    %c8_i32_35 = arith.constant 8 : i32
    %146 = arith.muli %c4_i32, %c8_i32_35 : i32
    %147 = tpu.assume_multiple %146, 8 : i32
    %148 = arith.index_cast %147 : i32 to index
    %c0_36 = arith.constant 0 : index
    %149 = vector.load %arg8[%148, %c0_36] : memref<64x384xf32, #tpu.memory_space<vmem>>, vector<8x384xf32>
    %150 = arith.truncf %145 : vector<8x128xf32> to vector<8x128xbf16>
    %cst_37 = arith.constant dense<0.000000e+00> : vector<8x384xf32>
    %151 = tpu.matmul %150, %7, %cst_37 {dimension_numbers = #tpu.dot_dimension_numbers<[1], [0], [0], [1], [0, 0, 1, 1], [], []>} : vector<8x128xbf16>, vector<128x384xbf16>, vector<8x384xf32> -> vector<8x384xf32>
    %152 = vector.extract_strided_slice %149 {offsets = [0, 0], sizes = [8, 128], strides = [1, 1]} : vector<8x384xf32> to vector<8x128xf32>
    %153 = vector.extract_strided_slice %151 {offsets = [0, 0], sizes = [8, 128], strides = [1, 1]} : vector<8x384xf32> to vector<8x128xf32>
    %154 = arith.addf %152, %153 : vector<8x128xf32>
    %155 = arith.negf %154 : vector<8x128xf32>
    %156 = math.exp %155 : vector<8x128xf32>
    %cst_38 = arith.constant 1.000000e+00 : f32
    %157 = vector.broadcast %cst_38 : f32 to vector<8x128xf32>
    %158 = arith.addf %157, %156 : vector<8x128xf32>
    %159 = arith.divf %157, %158 : vector<8x128xf32>
    %160 = vector.extract_strided_slice %149 {offsets = [0, 128], sizes = [8, 128], strides = [1, 1]} : vector<8x384xf32> to vector<8x128xf32>
    %161 = vector.extract_strided_slice %151 {offsets = [0, 128], sizes = [8, 128], strides = [1, 1]} : vector<8x384xf32> to vector<8x128xf32>
    %162 = arith.addf %160, %161 : vector<8x128xf32>
    %163 = arith.negf %162 : vector<8x128xf32>
    %164 = math.exp %163 : vector<8x128xf32>
    %cst_39 = arith.constant 1.000000e+00 : f32
    %165 = vector.broadcast %cst_39 : f32 to vector<8x128xf32>
    %166 = arith.addf %165, %164 : vector<8x128xf32>
    %167 = arith.divf %165, %166 : vector<8x128xf32>
    %168 = vector.extract_strided_slice %149 {offsets = [0, 256], sizes = [8, 128], strides = [1, 1]} : vector<8x384xf32> to vector<8x128xf32>
    %169 = vector.extract_strided_slice %151 {offsets = [0, 256], sizes = [8, 128], strides = [1, 1]} : vector<8x384xf32> to vector<8x128xf32>
    %170 = vector.broadcast %8 : vector<1x128xf32> to vector<8x128xf32>
    %171 = arith.addf %169, %170 : vector<8x128xf32>
    %172 = arith.mulf %159, %171 : vector<8x128xf32>
    %173 = arith.addf %168, %172 : vector<8x128xf32>
    %174 = math.tanh %173 : vector<8x128xf32>
    %cst_40 = arith.constant 1.000000e+00 : f32
    %175 = vector.broadcast %cst_40 : f32 to vector<8x128xf32>
    %176 = arith.subf %175, %167 : vector<8x128xf32>
    %177 = arith.mulf %176, %174 : vector<8x128xf32>
    %178 = arith.mulf %167, %145 : vector<8x128xf32>
    %179 = arith.addf %177, %178 : vector<8x128xf32>
    %c5_i32 = arith.constant 5 : i32
    %c8_i32_41 = arith.constant 8 : i32
    %180 = arith.muli %c5_i32, %c8_i32_41 : i32
    %181 = tpu.assume_multiple %180, 8 : i32
    %182 = arith.index_cast %181 : i32 to index
    %c0_42 = arith.constant 0 : index
    %183 = vector.load %arg8[%182, %c0_42] : memref<64x384xf32, #tpu.memory_space<vmem>>, vector<8x384xf32>
    %184 = arith.truncf %179 : vector<8x128xf32> to vector<8x128xbf16>
    %cst_43 = arith.constant dense<0.000000e+00> : vector<8x384xf32>
    %185 = tpu.matmul %184, %7, %cst_43 {dimension_numbers = #tpu.dot_dimension_numbers<[1], [0], [0], [1], [0, 0, 1, 1], [], []>} : vector<8x128xbf16>, vector<128x384xbf16>, vector<8x384xf32> -> vector<8x384xf32>
    %186 = vector.extract_strided_slice %183 {offsets = [0, 0], sizes = [8, 128], strides = [1, 1]} : vector<8x384xf32> to vector<8x128xf32>
    %187 = vector.extract_strided_slice %185 {offsets = [0, 0], sizes = [8, 128], strides = [1, 1]} : vector<8x384xf32> to vector<8x128xf32>
    %188 = arith.addf %186, %187 : vector<8x128xf32>
    %189 = arith.negf %188 : vector<8x128xf32>
    %190 = math.exp %189 : vector<8x128xf32>
    %cst_44 = arith.constant 1.000000e+00 : f32
    %191 = vector.broadcast %cst_44 : f32 to vector<8x128xf32>
    %192 = arith.addf %191, %190 : vector<8x128xf32>
    %193 = arith.divf %191, %192 : vector<8x128xf32>
    %194 = vector.extract_strided_slice %183 {offsets = [0, 128], sizes = [8, 128], strides = [1, 1]} : vector<8x384xf32> to vector<8x128xf32>
    %195 = vector.extract_strided_slice %185 {offsets = [0, 128], sizes = [8, 128], strides = [1, 1]} : vector<8x384xf32> to vector<8x128xf32>
    %196 = arith.addf %194, %195 : vector<8x128xf32>
    %197 = arith.negf %196 : vector<8x128xf32>
    %198 = math.exp %197 : vector<8x128xf32>
    %cst_45 = arith.constant 1.000000e+00 : f32
    %199 = vector.broadcast %cst_45 : f32 to vector<8x128xf32>
    %200 = arith.addf %199, %198 : vector<8x128xf32>
    %201 = arith.divf %199, %200 : vector<8x128xf32>
    %202 = vector.extract_strided_slice %183 {offsets = [0, 256], sizes = [8, 128], strides = [1, 1]} : vector<8x384xf32> to vector<8x128xf32>
    %203 = vector.extract_strided_slice %185 {offsets = [0, 256], sizes = [8, 128], strides = [1, 1]} : vector<8x384xf32> to vector<8x128xf32>
    %204 = vector.broadcast %8 : vector<1x128xf32> to vector<8x128xf32>
    %205 = arith.addf %203, %204 : vector<8x128xf32>
    %206 = arith.mulf %193, %205 : vector<8x128xf32>
    %207 = arith.addf %202, %206 : vector<8x128xf32>
    %208 = math.tanh %207 : vector<8x128xf32>
    %cst_46 = arith.constant 1.000000e+00 : f32
    %209 = vector.broadcast %cst_46 : f32 to vector<8x128xf32>
    %210 = arith.subf %209, %201 : vector<8x128xf32>
    %211 = arith.mulf %210, %208 : vector<8x128xf32>
    %212 = arith.mulf %201, %179 : vector<8x128xf32>
    %213 = arith.addf %211, %212 : vector<8x128xf32>
    %c6_i32 = arith.constant 6 : i32
    %c8_i32_47 = arith.constant 8 : i32
    %214 = arith.muli %c6_i32, %c8_i32_47 : i32
    %215 = tpu.assume_multiple %214, 8 : i32
    %216 = arith.index_cast %215 : i32 to index
    %c0_48 = arith.constant 0 : index
    %217 = vector.load %arg8[%216, %c0_48] : memref<64x384xf32, #tpu.memory_space<vmem>>, vector<8x384xf32>
    %218 = arith.truncf %213 : vector<8x128xf32> to vector<8x128xbf16>
    %cst_49 = arith.constant dense<0.000000e+00> : vector<8x384xf32>
    %219 = tpu.matmul %218, %7, %cst_49 {dimension_numbers = #tpu.dot_dimension_numbers<[1], [0], [0], [1], [0, 0, 1, 1], [], []>} : vector<8x128xbf16>, vector<128x384xbf16>, vector<8x384xf32> -> vector<8x384xf32>
    %220 = vector.extract_strided_slice %217 {offsets = [0, 0], sizes = [8, 128], strides = [1, 1]} : vector<8x384xf32> to vector<8x128xf32>
    %221 = vector.extract_strided_slice %219 {offsets = [0, 0], sizes = [8, 128], strides = [1, 1]} : vector<8x384xf32> to vector<8x128xf32>
    %222 = arith.addf %220, %221 : vector<8x128xf32>
    %223 = arith.negf %222 : vector<8x128xf32>
    %224 = math.exp %223 : vector<8x128xf32>
    %cst_50 = arith.constant 1.000000e+00 : f32
    %225 = vector.broadcast %cst_50 : f32 to vector<8x128xf32>
    %226 = arith.addf %225, %224 : vector<8x128xf32>
    %227 = arith.divf %225, %226 : vector<8x128xf32>
    %228 = vector.extract_strided_slice %217 {offsets = [0, 128], sizes = [8, 128], strides = [1, 1]} : vector<8x384xf32> to vector<8x128xf32>
    %229 = vector.extract_strided_slice %219 {offsets = [0, 128], sizes = [8, 128], strides = [1, 1]} : vector<8x384xf32> to vector<8x128xf32>
    %230 = arith.addf %228, %229 : vector<8x128xf32>
    %231 = arith.negf %230 : vector<8x128xf32>
    %232 = math.exp %231 : vector<8x128xf32>
    %cst_51 = arith.constant 1.000000e+00 : f32
    %233 = vector.broadcast %cst_51 : f32 to vector<8x128xf32>
    %234 = arith.addf %233, %232 : vector<8x128xf32>
    %235 = arith.divf %233, %234 : vector<8x128xf32>
    %236 = vector.extract_strided_slice %217 {offsets = [0, 256], sizes = [8, 128], strides = [1, 1]} : vector<8x384xf32> to vector<8x128xf32>
    %237 = vector.extract_strided_slice %219 {offsets = [0, 256], sizes = [8, 128], strides = [1, 1]} : vector<8x384xf32> to vector<8x128xf32>
    %238 = vector.broadcast %8 : vector<1x128xf32> to vector<8x128xf32>
    %239 = arith.addf %237, %238 : vector<8x128xf32>
    %240 = arith.mulf %227, %239 : vector<8x128xf32>
    %241 = arith.addf %236, %240 : vector<8x128xf32>
    %242 = math.tanh %241 : vector<8x128xf32>
    %cst_52 = arith.constant 1.000000e+00 : f32
    %243 = vector.broadcast %cst_52 : f32 to vector<8x128xf32>
    %244 = arith.subf %243, %235 : vector<8x128xf32>
    %245 = arith.mulf %244, %242 : vector<8x128xf32>
    %246 = arith.mulf %235, %213 : vector<8x128xf32>
    %247 = arith.addf %245, %246 : vector<8x128xf32>
    %c7_i32 = arith.constant 7 : i32
    %c8_i32_53 = arith.constant 8 : i32
    %248 = arith.muli %c7_i32, %c8_i32_53 : i32
    %249 = tpu.assume_multiple %248, 8 : i32
    %250 = arith.index_cast %249 : i32 to index
    %c0_54 = arith.constant 0 : index
    %251 = vector.load %arg8[%250, %c0_54] : memref<64x384xf32, #tpu.memory_space<vmem>>, vector<8x384xf32>
    %252 = arith.truncf %247 : vector<8x128xf32> to vector<8x128xbf16>
    %cst_55 = arith.constant dense<0.000000e+00> : vector<8x384xf32>
    %253 = tpu.matmul %252, %7, %cst_55 {dimension_numbers = #tpu.dot_dimension_numbers<[1], [0], [0], [1], [0, 0, 1, 1], [], []>} : vector<8x128xbf16>, vector<128x384xbf16>, vector<8x384xf32> -> vector<8x384xf32>
    %254 = vector.extract_strided_slice %251 {offsets = [0, 0], sizes = [8, 128], strides = [1, 1]} : vector<8x384xf32> to vector<8x128xf32>
    %255 = vector.extract_strided_slice %253 {offsets = [0, 0], sizes = [8, 128], strides = [1, 1]} : vector<8x384xf32> to vector<8x128xf32>
    %256 = arith.addf %254, %255 : vector<8x128xf32>
    %257 = arith.negf %256 : vector<8x128xf32>
    %258 = math.exp %257 : vector<8x128xf32>
    %cst_56 = arith.constant 1.000000e+00 : f32
    %259 = vector.broadcast %cst_56 : f32 to vector<8x128xf32>
    %260 = arith.addf %259, %258 : vector<8x128xf32>
    %261 = arith.divf %259, %260 : vector<8x128xf32>
    %262 = vector.extract_strided_slice %251 {offsets = [0, 128], sizes = [8, 128], strides = [1, 1]} : vector<8x384xf32> to vector<8x128xf32>
    %263 = vector.extract_strided_slice %253 {offsets = [0, 128], sizes = [8, 128], strides = [1, 1]} : vector<8x384xf32> to vector<8x128xf32>
    %264 = arith.addf %262, %263 : vector<8x128xf32>
    %265 = arith.negf %264 : vector<8x128xf32>
    %266 = math.exp %265 : vector<8x128xf32>
    %cst_57 = arith.constant 1.000000e+00 : f32
    %267 = vector.broadcast %cst_57 : f32 to vector<8x128xf32>
    %268 = arith.addf %267, %266 : vector<8x128xf32>
    %269 = arith.divf %267, %268 : vector<8x128xf32>
    %270 = vector.extract_strided_slice %251 {offsets = [0, 256], sizes = [8, 128], strides = [1, 1]} : vector<8x384xf32> to vector<8x128xf32>
    %271 = vector.extract_strided_slice %253 {offsets = [0, 256], sizes = [8, 128], strides = [1, 1]} : vector<8x384xf32> to vector<8x128xf32>
    %272 = vector.broadcast %8 : vector<1x128xf32> to vector<8x128xf32>
    %273 = arith.addf %271, %272 : vector<8x128xf32>
    %274 = arith.mulf %261, %273 : vector<8x128xf32>
    %275 = arith.addf %270, %274 : vector<8x128xf32>
    %276 = math.tanh %275 : vector<8x128xf32>
    %cst_58 = arith.constant 1.000000e+00 : f32
    %277 = vector.broadcast %cst_58 : f32 to vector<8x128xf32>
    %278 = arith.subf %277, %269 : vector<8x128xf32>
    %279 = arith.mulf %278, %276 : vector<8x128xf32>
    %280 = arith.mulf %269, %247 : vector<8x128xf32>
    %281 = arith.addf %279, %280 : vector<8x128xf32>
    %c8_i32_59 = arith.constant 8 : i32
    %c0_60 = arith.constant 0 : index
    %c0_61 = arith.constant 0 : index
    %282 = vector.load %arg5[%c0_60, %c0_61] : memref<128x16xf32, #tpu.memory_space<vmem>>, vector<128x16xf32>
    %cst_62 = arith.constant dense<0.000000e+00> : vector<8x16xf32>
    %283 = tpu.matmul %281, %282, %cst_62 {dimension_numbers = #tpu.dot_dimension_numbers<[1], [0], [0], [1], [0, 0, 1, 1], [], []>} : vector<8x128xf32>, vector<128x16xf32>, vector<8x16xf32> -> vector<8x16xf32>
    %c0_63 = arith.constant 0 : index
    %c0_64 = arith.constant 0 : index
    %284 = vector.load %arg6[%c0_63, %c0_64] : memref<1x16xf32, #tpu.memory_space<vmem>>, vector<1x16xf32>
    %285 = vector.broadcast %284 : vector<1x16xf32> to vector<8x16xf32>
    %286 = arith.addf %283, %285 : vector<8x16xf32>
    %287 = arith.negf %286 : vector<8x16xf32>
    %288 = math.exp %287 : vector<8x16xf32>
    %cst_65 = arith.constant 1.000000e+00 : f32
    %289 = vector.broadcast %cst_65 : f32 to vector<8x16xf32>
    %290 = arith.addf %289, %288 : vector<8x16xf32>
    %291 = arith.divf %289, %290 : vector<8x16xf32>
    %c0_66 = arith.constant 0 : index
    %c0_67 = arith.constant 0 : index
    %292 = vector.load %arg7[%c0_66, %c0_67] : memref<8x16xf32, #tpu.memory_space<vmem>>, vector<8x16xf32>
    tpu.vector_store %arg7[%c0_66, %c0_67], %291 {strides = array<i32>} : memref<8x16xf32, #tpu.memory_space<vmem>>, vector<8x16xf32>,
    return
  }
}

</mosaic_0001>

<bundles_post_ra>
// kernel: tpu_custom_call.1
= control target key start
LH: loop header
LB: loop body
LE: loop exit
PB: predicated region body
PF: predicated region fallthrough
CT: control target
= control target key end

     0   :  { %12 = vsyncpa [#allocation4], 0  ;;  %s2853_s0 = inlined_call_operand.vmem [shape: f32[64,16], index: 0, kind: input, shape index: {}]   ;;  %s2854_s1 = inlined_call_operand.hbm [shape: f32[16,384], index: 1, kind: input, shape index: {}]   ;;  %s2855_s2 = inlined_call_operand.vmem [shape: f32[1,384], index: 2, kind: input, shape index: {}]   ;;  %s2856_s3 = inlined_call_operand.vmem [shape: bf16[128,384], index: 3, kind: input, shape index: {}]   ;;  %s2857_s4 = inlined_call_operand.vmem [shape: f32[1,128], index: 4, kind: input, shape index: {}]   ;;  %s2858_s5 = inlined_call_operand.vmem [shape: f32[128,16], index: 5, kind: input, shape index: {}]   ;;  %s2859_s6 = inlined_call_operand.vmem [shape: f32[1,16], index: 6, kind: input, shape index: {}]   ;;  %s2860_s7 = inlined_call_operand.hbm [shape: f32[8,16], index: 7, kind: output, shape index: {}]  }
   0x1   :  { %13 = vsyncpa [#allocation5], 0  ;;  %s2101_s24 = smov [#allocation3]   ;;  %s2053_s28 = scalar_lea.hbm %s2854_s1, 768 }
   0x2   :  { %s21_s25 = sshll.u32 %s2101_s24, 4  ;;  %p2054_p0 = scmp.ne.s32.totalorder %s2854_s1, %s2053_s28  ;;  %s22_s25 = int_to_ptr.vmem [resolvable:$true] %s21_s25 }
   0x3   :  { %p2057_p1 = scmp.lt.u32.totalorder %s2053_s28, %s2854_s1 }
   0x5   :  { %p2059_p2 = pnand %p2057_p1, %p2054_p0 }
   0x7   :  { %2062 = shalt.err (!%p2059_p2)
}
   0x8   :  { %s2063_s10 = scalar_lea.vmem %s22_s25, 768  ;;  %p2068_p4 = scmp.lt.s32.totalorder %s22_s25, %s22_s25 }
   0x9   :  { %p2064_p3 = scmp.ne.s32.totalorder %s22_s25, %s2063_s10  ;;  %p2069_p5 = scmp.lt.s32.totalorder %s2063_s10, %s2063_s10 }
   0xb   :  { %p2070_p6 = por %p2069_p5, %p2068_p4 }
   0xd   :  { %p2071_p7 = pnand %p2070_p6, %p2064_p3 }
   0xf   :  { %2074 = shalt.err (!%p2071_p7)
}
  0x10   :  { %s2102_s11 = smov 384   ;;  %s2103_s12 = smov 24  }
  0x11   :  { %27 = dma.hbm_to_vmem [thread:$0]  %s2854_s1, 768, %s22_s25, [#allocation4], %s2102_s11, %s2102_s11, %s2103_s12  }
  0x12   :  { %2097 = dma.done.wait [#allocation4], 768  }
  0x13   :  { %2098 = vsyncadd [#allocation4], 4294966528  ;;  %v2863_v0 = vmov 0.0   ;;  %v51_v1 = vld [vmem:[#allocation3 + $0x8] sm:$0xff]  ;;  %v54_v2 = vld [vmem:[#allocation3 + $0x20] sm:$0xff]  ;;  %vm73_vm0 = vcmask 130048   ;;  %v58_v43 = vlaneseq }
  0x14   :  { %162 = vmatprep.mubr.f32.mxu0 %v2863_v0  ;;  %v50_v3 = vld [vmem:[#allocation3] sm:$0xff]  ;;  %v1877_v4 = vpack.c.bf16 %v54_v2, %v51_v1  ;;  %v53_v5 = vld [vmem:[#allocation3 + $0x18] sm:$0xff]  ;;  %v43_v11 = vld [vmem:[%s2853_s0 + $0x8] sm:$0xff]  ;;  %vm2105_vm1 = vmmov 0   ;;  %v2861_v40 = vmov 0   ;;  %s2108_s23 = smov [#allocation6]  }
  0x15   :  { %v42_v6 = vld [vmem:[%s2853_s0] sm:$0xff]  ;;  %v1879_v7 = vpack.c.bf16 %v53_v5, %v50_v3  ;;  %v2180_v10 = vld [vmem:[%s2856_s3 + $0x1c] ss:$12 sps:$4 sm:$0xff]   ;;  %v52_v14 = vld [vmem:[#allocation3 + $0x10] sm:$0xff]  ;;  %v59_v44 = vshrl.u32 %v58_v43, 7  ;;  %s1492_s24 = sshll.u32 %s2108_s23, 4  ;;  %s1493_s24 = int_to_ptr.vmem [resolvable:$true] %s1492_s24 }
  0x16   :  { %v2168_v8 = vld [vmem:[%s2856_s3 + $0x4] ss:$12 sps:$4 sm:$0xff]   ;;  %1670 = vmatprep.mubr.msk.f32.mxu1 %vm73_vm0, %v42_v6  ;;  %1878 = vmatprep.subr.bf16.mxu0 %v1877_v4  ;;  %v2174_v9 = vld [vmem:[%s2856_s3] ss:$12 sps:$4 sm:$0xff]   ;;  %v2219_v20 = vld [vmem:[%s2856_s3 + $0x8] ss:$12 sps:$4 sm:$0xff]   ;;  %p2080_p9 = scmp.lt.s32.totalorder %s1493_s24, %s1493_s24 }
  0x17   :  { %1880 = vmatpush1.bf16.msra.mxu0 %v1879_v7  ;;  %v2191_v12 = vld [vmem:[%s2856_s3 + $0x18] ss:$12 sps:$4 sm:$0xff]   ;;  %v2197_v13 = vld [vmem:[%s2856_s3 + $0x34] ss:$12 sps:$4 sm:$0xff]   ;;  %v55_v15 = vld [vmem:[#allocation3 + $0x28] sm:$0xff]  ;;  %v60_v45 = vsub.s32 0, %v59_v44 }
  0x18   :  { %507 = vmatprep.subr.bf16.mxu0 %v2168_v8  ;;  %v44_v16 = vld [vmem:[%s2853_s0 + $0x10] sm:$0xff]  ;;  %v1881_v17 = vpack.c.bf16 %v55_v15, %v52_v14  ;;  %v2214_v19 = vld [vmem:[%s2856_s3 + $0x4c] ss:$12 sps:$4 sm:$0xff]   ;;  %v46_v25 = vld [vmem:[%s2853_s0 + $0x20] sm:$0xff]  ;;  %v64_v48 = vsub.s32 1, %v59_v44  ;;  %v68_v51 = vsub.s32 2, %v59_v44 }
  0x19   :  { %v2208_v18 = vld [vmem:[%s2856_s3 + $0x30] ss:$12 sps:$4 sm:$0xff]   ;;  %v2231_v22 = vld [vmem:[%s2856_s3 + $0x48] ss:$12 sps:$4 sm:$0xff]   ;;  %v2244_v24 = vld [vmem:[%s2856_s3 + $0x20] ss:$12 sps:$4 sm:$0xff]  }
  0x1a   :  { %1508 = vmatmul.mubr.msk.f32.vlgmr.msra.gmra.mrb[0].mxu0 %vm73_vm0, %v42_v6  ;;  %1882 = vmatprep.subr.bf16.mxu1 %v1881_v17  ;;  %v45_v21 = vld [vmem:[%s2853_s0 + $0x18] sm:$0xff]  ;;  %v2237_v23 = vld [vmem:[%s2856_s3 + $0x64] ss:$12 sps:$4 sm:$0xff]   ;;  %v2257_v26 = vld [vmem:[%s2856_s3 + $0x60] ss:$12 sps:$4 sm:$0xff]   ;;  %s2075_s25 = scalar_lea.vmem %s1493_s24, 128 }
  0x1b   :  { %508 = vmatpush1.bf16.msra.mxu0 %v2174_v9  ;;  %168 = vmatprep.mubr.f32.mxu0 %v2863_v0  ;;  %v2263_v27 = vld [vmem:[%s2856_s3 + $0x7c] ss:$12 sps:$4 sm:$0xff]   ;;  %v2270_v28 = vld [vmem:[%s2856_s3 + $0x38] ss:$12 sps:$4 sm:$0xff]   ;;  %v48_v31 = vld [vmem:[%s2853_s0 + $0x30] sm:$0xff]  ;;  %p2076_p8 = scmp.ne.s32.totalorder %s1493_s24, %s2075_s25  ;;  %p2081_p10 = scmp.lt.s32.totalorder %s2075_s25, %s2075_s25 }
  0x1c   :  { %509 = vmatprep.subr.bf16.mxu0 %v2180_v10  ;;  %1884 = vmatpush3.bf16.msra.mxu1 %v1881_v17  ;;  %v47_v29 = vld [vmem:[%s2853_s0 + $0x28] sm:$0xff]  ;;  %v2283_v30 = vld [vmem:[%s2856_s3 + $0x78] ss:$12 sps:$4 sm:$0xff]   ;;  %v2292_v32 = vld [vmem:[%s2856_s3 + $0x94] ss:$12 sps:$4 sm:$0xff]  }
  0x1d   :  { %1682 = vmatprep.subr.bf16.mxu1 %v2863_v0  ;;  %v2299_v33 = vld [vmem:[%s2856_s3 + $0x50] ss:$12 sps:$4 sm:$0xff]   ;;  %v2318_v36 = vld [vmem:[%s2856_s3 + $0xac] ss:$12 sps:$4 sm:$0xff]   ;;  %v2325_v37 = vld [vmem:[%s2856_s3 + $0x68] ss:$12 sps:$4 sm:$0xff]   ;;  %p2082_p11 = por %p2081_p10, %p2080_p9 }
  0x1e   :  { %1509 = vmatmul.mubr.msk.f32.gmra.mrb[2].mxu0 %vm73_vm0, %v43_v11  ;;  %v2309_v34 = vld [vmem:[%s2856_s3 + $0x90] ss:$12 sps:$4 sm:$0xff]   ;;  %v2336_v38 = vld [vmem:[%s2856_s3 + $0xa8] ss:$12 sps:$4 sm:$0xff]   ;;  %v2343_v39 = vld [vmem:[%s2856_s3 + $0x80] ss:$12 sps:$4 sm:$0xff]  }
  0x1f   :  { %510 = vmatpush1.bf16.msra.mxu0 %v2191_v12  ;;  %174 = vmatprep.mubr.f32.mxu0 %v2863_v0  ;;  %v49_v35 = vld [vmem:[%s2853_s0 + $0x38] sm:$0xff]  ;;  %v56_v46 = vld [vmem:[%s2855_s2] sm:$0x7]  ;;  %p2083_p12 = pnand %p2082_p11, %p2076_p8 }
  0x20   :  { %511 = vmatprep.subr.bf16.mxu0 %v2197_v13  ;;  %1671 = vmatmul.mubr.msk.f32.vlgmr.msra.gmra.mrb[0].mxu1 %vm73_vm0, %v43_v11  ;;  %v2354_v41 = vld [vmem:[%s2856_s3 + $0x98] ss:$12 sps:$4 sm:$0xff]   ;;  %v2365_v42 = vld [vmem:[%s2856_s3 + $0xb0] ss:$12 sps:$4 sm:$0xff]   ;;  %v61_v50 = vrot.slane %v56_v46, %v60_v45  ;;  %v65_v52 = vrot.slane %v56_v46, %v64_v48  ;;  %v2410_v57 = vrot.slane %v56_v46, %v68_v51 }
  0x21   :  { %1683 = vmatpush3.bf16.msra.mxu1 %v2219_v20  ;;  %1673 = vmatprep.mubr.msk.f32.mxu1 %vm73_vm0, %v44_v16 }
  0x22   :  { %1510 = vmatmul.mubr.msk.f32.gmra.mrb[4].mxu0 %vm73_vm0, %v44_v16  ;;  %1684 = vmatprep.subr.bf16.mxu1 %v2863_v0 }
  0x23   :  { %512 = vmatpush1.bf16.msra.mxu0 %v2208_v18  ;;  %180 = vmatprep.mubr.f32.mxu0 %v2863_v0 }
  0x24   :  { %513 = vmatprep.subr.bf16.mxu0 %v2214_v19  ;;  %1674 = vmatmul.mubr.msk.f32.gmra.mrb[2].mxu1 %vm73_vm0, %v45_v21 }
  0x25   :  { %1685 = vmatpush3.bf16.msra.mxu1 %v2244_v24  ;;  %1676 = vmatprep.mubr.msk.f32.mxu1 %vm73_vm0, %v46_v25 }
  0x26   :  { %1511 = vmatmul.mubr.msk.f32.gmra.mrb[6].mxu0 %vm73_vm0, %v45_v21  ;;  %1686 = vmatprep.subr.bf16.mxu1 %v2863_v0 }
  0x27   :  { %514 = vmatpush1.bf16.msra.mxu0 %v2231_v22  ;;  %186 = vmatprep.mubr.f32.mxu0 %v2863_v0 }
  0x28   :  { %515 = vmatprep.subr.bf16.mxu0 %v2237_v23  ;;  %1677 = vmatmul.mubr.msk.f32.gmra.mrb[4].mxu1 %vm73_vm0, %v47_v29 }
  0x29   :  { %1687 = vmatpush3.bf16.msra.mxu1 %v2270_v28  ;;  %1679 = vmatprep.mubr.msk.f32.mxu1 %vm73_vm0, %v48_v31 }
  0x2a   :  { %1512 = vmatmul.mubr.msk.f32.gmra.mrb[8].mxu0 %vm73_vm0, %v46_v25  ;;  %1688 = vmatprep.subr.bf16.mxu1 %v2863_v0 }
  0x2b   :  { %516 = vmatpush1.bf16.msra.mxu0 %v2257_v26  ;;  %192 = vmatprep.mubr.f32.mxu0 %v2863_v0 }
  0x2c   :  { %517 = vmatprep.subr.bf16.mxu0 %v2263_v27  ;;  %1680 = vmatmul.mubr.msk.f32.gmra.mrb[6].mxu1 %vm73_vm0, %v49_v35 }
  0x2d   :  { %1689 = vmatpush3.bf16.msra.mxu1 %v2299_v33  ;;  %1698 = vmatprep.mubr.msk.bf16.mxu1 %vm2105_vm1, %v2863_v0 }
  0x2e   :  { %1513 = vmatmul.mubr.msk.f32.gmra.mrb[10].mxu0 %vm73_vm0, %v47_v29  ;;  %1690 = vmatprep.subr.bf16.mxu1 %v2863_v0 }
  0x2f   :  { %518 = vmatpush1.bf16.msra.mxu0 %v2283_v30  ;;  %198 = vmatprep.mubr.f32.mxu0 %v2863_v0 }
  0x30   :  { %519 = vmatprep.subr.bf16.mxu0 %v2292_v32 }
  0x31   :  { %1691 = vmatpush3.bf16.msra.mxu1 %v2325_v37 }
  0x32   :  { %1514 = vmatmul.mubr.msk.f32.gmra.mrb[12].mxu0 %vm73_vm0, %v48_v31  ;;  %1692 = vmatprep.subr.bf16.mxu1 %v2863_v0 }
  0x33   :  { %520 = vmatpush1.bf16.msra.mxu0 %v2309_v34  ;;  %204 = vmatprep.mubr.f32.mxu0 %v2863_v0 }
  0x34   :  { %521 = vmatprep.subr.bf16.mxu0 %v2318_v36 }
  0x35   :  { %1693 = vmatpush3.bf16.msra.mxu1 %v2343_v39 }
  0x36   :  { %1515 = vmatmul.mubr.msk.f32.gmra.mrb[14].mxu0 %vm73_vm0, %v49_v35  ;;  %1694 = vmatprep.subr.bf16.mxu1 %v2863_v0 }
  0x37   :  { %522 = vmatpush1.bf16.msra.mxu0 %v2336_v38  ;;  %539 = vmatprep.mubr.bf16.mxu0 %v2861_v40 }
  0x38   :  { %623 = vmatprep.subr.bf16.mxu0 %v2168_v8 }
  0x39   :  { %1695 = vmatpush3.bf16.msra.mxu1 %v2354_v41 }
  0x3a   :  { %540 = vmatmul.mubr.bf16.vlgmr.msra.gmra.mrb[16].mxu0 %v2861_v40  ;;  %1696 = vmatprep.subr.bf16.mxu1 %v2863_v0 }
  0x3b   :  { %624 = vmatpush1.bf16.msra.mxu0 %v2174_v9  ;;  %655 = vmatprep.mubr.bf16.mxu0 %v2861_v40 }
  0x3c   :  { %625 = vmatprep.subr.bf16.mxu0 %v2180_v10 }
  0x3d   :  { %1697 = vmatpush3.bf16.msra.mxu1 %v2365_v42 }
  0x3e   :  { %1702 = vmatprep.subr.bf16.mxu1 %v2863_v0 }
  0x3f   :  { %626 = vmatpush1.bf16.msra.mxu0 %v2191_v12 }
  0x40   :  { %627 = vmatprep.subr.bf16.mxu0 %v2197_v13  ;;  %1699 = vmatmul.mubr.bf16.vlgmr.msra.gmra.mrb[8].mxu1 %v2861_v40 }
  0x41   :  { %1703 = vmatpush3.bf16.msra.mxu1 %v2219_v20  ;;  %1718 = vmatprep.mubr.msk.bf16.mxu1 %vm2105_vm1, %v2863_v0 }
  0x42   :  { %1704 = vmatprep.subr.bf16.mxu1 %v2863_v0 }
  0x43   :  { %628 = vmatpush1.bf16.msra.mxu0 %v2208_v18 }
  0x44   :  { %629 = vmatprep.subr.bf16.mxu0 %v2214_v19 }
  0x45   :  { %1705 = vmatpush3.bf16.msra.mxu1 %v2244_v24 }
  0x46   :  { %1706 = vmatprep.subr.bf16.mxu1 %v2863_v0 }
  0x47   :  { %630 = vmatpush1.bf16.msra.mxu0 %v2231_v22 }
  0x48   :  { %631 = vmatprep.subr.bf16.mxu0 %v2237_v23 }
  0x49   :  { %1707 = vmatpush3.bf16.msra.mxu1 %v2270_v28 }
  0x4a   :  { %1708 = vmatprep.subr.bf16.mxu1 %v2863_v0 }
  0x4b   :  { %632 = vmatpush1.bf16.msra.mxu0 %v2257_v26 }
  0x4c   :  { %633 = vmatprep.subr.bf16.mxu0 %v2263_v27 }
  0x4d   :  { %1709 = vmatpush3.bf16.msra.mxu1 %v2299_v33 }
  0x4e   :  { %1710 = vmatprep.subr.bf16.mxu1 %v2863_v0 }
  0x4f   :  { %634 = vmatpush1.bf16.msra.mxu0 %v2283_v30 }
  0x50   :  { %635 = vmatprep.subr.bf16.mxu0 %v2292_v32 }
  0x51   :  { %1711 = vmatpush3.bf16.msra.mxu1 %v2325_v37 }
  0x52   :  { %1712 = vmatprep.subr.bf16.mxu1 %v2863_v0 }
  0x53   :  { %636 = vmatpush1.bf16.msra.mxu0 %v2309_v34 }
  0x54   :  { %637 = vmatprep.subr.bf16.mxu0 %v2318_v36 }
  0x55   :  { %1713 = vmatpush3.bf16.msra.mxu1 %v2343_v39 }
  0x56   :  { %1714 = vmatprep.subr.bf16.mxu1 %v2863_v0 }
  0x57   :  { %638 = vmatpush1.bf16.msra.mxu0 %v2336_v38 }
  0x58   :  { %733 = vmatprep.subr.bf16.mxu0 %v2168_v8 }
  0x59   :  { %1715 = vmatpush3.bf16.msra.mxu1 %v2354_v41 }
  0x5a   :  { %1716 = vmatprep.subr.bf16.mxu1 %v2863_v0 }
  0x5d   :  { %1717 = vmatpush3.bf16.msra.mxu1 %v2365_v42 }
  0x5e   :  { %1722 = vmatprep.subr.bf16.mxu1 %v2863_v0 }
  0xed   :  { %v164_v47 = vpop.f32.mrb[0].mxu0 }
  0xee   :  { %v166_v49 = vpop.f32.mrb[1].mxu0 }
  0xf1   :  { %v170_v53 = vpop.f32.mrb[2].mxu0 }
  0xf2   :  { %v2406_v54 = vadd.f32 %v170_v53, %v61_v50  ;;  %v172_v55 = vpop.f32.mrb[3].mxu0 }
  0xf3   :  { %v2408_v56 = vadd.f32 %v172_v55, %v65_v52  ;;  %v1672_v62 = vpop.f32.mrb[0].mxu1 }
  0xf4   :  { %v2417_v63 = vadd.f32 %v1672_v62, %v2410_v57  ;;  %v277_v1 = vpop.f32.mrb[1].mxu1 }
  0xf5   :  { %v176_v58 = vpop.f32.mrb[4].mxu0 }
  0xf6   :  { %v2412_v59 = vadd.f32 %v176_v58, %v61_v50  ;;  %v178_v60 = vpop.f32.mrb[5].mxu0 }
  0xf7   :  { %v2414_v61 = vadd.f32 %v178_v60, %v65_v52  ;;  %v1675_v6 = vpop.f32.mrb[2].mxu1 }
  0xf8   :  { %v2424_v7 = vadd.f32 %v1675_v6, %v2410_v57  ;;  %v287_v11 = vpop.f32.mrb[3].mxu1 }
  0xf9   :  { %v182_v2 = vpop.f32.mrb[6].mxu0  ;;  %v2427_v15 = vadd.f32 %v287_v11, %v2410_v57 }
  0xfa   :  { %v2419_v3 = vadd.f32 %v182_v2, %v61_v50  ;;  %v184_v4 = vpop.f32.mrb[7].mxu0 }
  0xfb   :  { %v2421_v5 = vadd.f32 %v184_v4, %v65_v52  ;;  %v1678_v25 = vpop.f32.mrb[4].mxu1 }
  0xfc   :  { %v2434_v29 = vadd.f32 %v1678_v25, %v2410_v57  ;;  %v297_v31 = vpop.f32.mrb[5].mxu1  ;;  %v167_v25 = vadd.f32 %v166_v49, %v65_v52 }
  0xfd   :  { %v188_v14 = vpop.f32.mrb[8].mxu0  ;;  %v2437_v43 = vadd.f32 %v297_v31, %v2410_v57 }
  0xfe   :  { %v2429_v16 = vadd.f32 %v188_v14, %v61_v50  ;;  %v190_v17 = vpop.f32.mrb[9].mxu0 }
  0xff   :  { %v2431_v21 = vadd.f32 %v190_v17, %v65_v52  ;;  %v1681_v48 = vpop.f32.mrb[6].mxu1  ;;  %v165_v17 = vadd.f32 %v164_v47, %v61_v50  ;;  %v2460_v47 = vld [vmem:[%s2857_s4] ss:$0 sm:$0xff] }
 0x100   :  { %v2444_v51 = vadd.f32 %v1681_v48, %v2410_v57  ;;  %v307_v53 = vpop.f32.mrb[7].mxu1 }
 0x101   :  { %v194_v35 = vpop.f32.mrb[10].mxu0  ;;  %v2447_v58 = vadd.f32 %v307_v53, %v2410_v57 }
 0x102   :  { %v2439_v44 = vadd.f32 %v194_v35, %v61_v50  ;;  %v196_v45 = vpop.f32.mrb[11].mxu0  ;;  %2865 = vst [vmem:[#allocation9_spill] sm:$0xff] %v2444_v51 }
 0x103   :  { %v2441_v46 = vadd.f32 %v196_v45, %v65_v52  ;;  %2866 = vst [vmem:[#allocation10_spill] sm:$0xff] %v2447_v58 }
 0x105   :  { %v200_v55 = vpop.f32.mrb[12].mxu0 }
 0x106   :  { %v2449_v60 = vadd.f32 %v200_v55, %v61_v50  ;;  %v202_v62 = vpop.f32.mrb[13].mxu0 }
 0x107   :  { %v2451_v2 = vadd.f32 %v202_v62, %v65_v52 }
 0x109   :  { %2867 = vst [vmem:[#allocation11_spill] sm:$0xff] %v2451_v2  ;;  %v206_v4 = vpop.f32.mrb[14].mxu0 }
 0x10a   :  { %v2453_v6 = vadd.f32 %v206_v4, %v61_v50  ;;  %v208_v11 = vpop.f32.mrb[15].mxu0  ;;  %v278_v50 = vadd.f32 %v277_v1, %v2410_v57  ;;  %v2869_v57 = vmov 0.0   ;;  %v2870_v1 = vmov 0  }
 0x10b   :  { %v2455_v14 = vadd.f32 %v208_v11, %v65_v52 }
 0x10c   :  { %2868 = vst [vmem:[#allocation12_spill] sm:$0xff] %v2453_v6 }
 0x10d   :  { %v541_v31 = vpop.f32.mrb[16].mxu0 }
 0x10e   :  { %v588_v35 = vadd.f32 %v541_v31, %v165_v17  ;;  %v543_v45 = vpop.f32.mrb[17].mxu0 }
 0x10f   :  { %v595_v48 = vadd.f32 %v543_v45, %v167_v25  ;;  %v545_v40 = vpop.f32.mrb[18].mxu0 }
 0x110   :  { %v1548_v53 = vmul.f32 -1.442695, %v588_v35  ;;  %v546_v0 = vpop.f32.mrb[19].mxu0 }
 0x111   :  { %v1549_v55 = vmul.f32 -1.442695, %v595_v48 }
 0x112   :  { %1949 = vpow2.f32 %v1548_v53 }
 0x113   :  { %v582_v51 = vpop.f32.mrb[8].mxu1  ;;  %1951 = vpow2.f32 %v1549_v55 }
 0x114   :  { %v1700_v62 = vpop.f32.mrb[9].mxu1  ;;  %v608_v40 = vadd.f32 %v2460_v47, %v582_v51 }
 0x115   :  { %v585_v58 = vpop.f32.mrb[10].mxu1 }
 0x116   :  { %v1701_v4 = vpop.f32.mrb[11].mxu1 }
 0x11c   :  { %v1950_v6 = vpop.eup %1949 }
 0x11d   :  { %v592_v2 = vadd.f32 1.0, %v1950_v6  ;;  %v1952_v11 = vpop.eup %1951 }
 0x11e   :  { %v599_v49 = vadd.f32 1.0, %v1952_v11 }
 0x11f   :  { %1953 = vrcp.f32 %v592_v2 }
 0x120   :  { %1955 = vrcp.f32 %v599_v49 }
 0x129   :  { %v1954_v0 = vpop.eup %1953 }
 0x12a   :  { %v609_v52 = vmul.f32 %v1954_v0, %v608_v40  ;;  %v1956_v58 = vpop.eup %1955 }
 0x12b   :  { %v612_v25 = vsub.f32 1.0, %v1956_v58  ;;  %v614_v31 = vmul.f32 0.0, %v1956_v58 }
 0x12c   :  { %v610_v17 = vadd.f32 %v609_v52, %v278_v50 }
 0x12e   :  { %1957 = vtanh.f32 %v610_v17 }
 0x138   :  { %v1958_v6 = vpop.eup %1957 }
 0x139   :  { %v613_v2 = vmul.f32 %v1958_v6, %v612_v25 }
 0x13b   :  { %v2464_v35 = vadd.f32 %v614_v31, %v613_v2 }
 0x13d   :  { %v622_v45 = vpack.c.bf16 %v2464_v35, %v2464_v35 }
 0x13f   :  { %656 = vmatmul.mubr.bf16.vlgmr.msra.gmra.mrb[20].mxu0 %v622_v45  ;;  %1719 = vmatmul.mubr.bf16.vlgmr.msra.gmra.mrb[12].mxu1 %v622_v45 }
 0x140   :  { %734 = vmatpush1.bf16.msra.mxu0 %v2174_v9  ;;  %1723 = vmatpush3.bf16.msra.mxu1 %v2219_v20 }
 0x141   :  { %735 = vmatprep.subr.bf16.mxu0 %v2180_v10  ;;  %1724 = vmatprep.subr.bf16.mxu1 %v2869_v57 }
 0x142   :  { %765 = vmatprep.mubr.bf16.mxu0 %v2870_v1  ;;  %1738 = vmatprep.mubr.msk.bf16.mxu1 %vm2105_vm1, %v2869_v57 }
 0x144   :  { %736 = vmatpush1.bf16.msra.mxu0 %v2191_v12  ;;  %1725 = vmatpush3.bf16.msra.mxu1 %v2244_v24 }
 0x145   :  { %737 = vmatprep.subr.bf16.mxu0 %v2197_v13  ;;  %1726 = vmatprep.subr.bf16.mxu1 %v2869_v57 }
 0x148   :  { %738 = vmatpush1.bf16.msra.mxu0 %v2208_v18  ;;  %1727 = vmatpush3.bf16.msra.mxu1 %v2270_v28 }
 0x149   :  { %739 = vmatprep.subr.bf16.mxu0 %v2214_v19  ;;  %1728 = vmatprep.subr.bf16.mxu1 %v2869_v57 }
 0x14c   :  { %740 = vmatpush1.bf16.msra.mxu0 %v2231_v22  ;;  %1729 = vmatpush3.bf16.msra.mxu1 %v2299_v33 }
 0x14d   :  { %741 = vmatprep.subr.bf16.mxu0 %v2237_v23  ;;  %1730 = vmatprep.subr.bf16.mxu1 %v2869_v57 }
 0x150   :  { %742 = vmatpush1.bf16.msra.mxu0 %v2257_v26  ;;  %1731 = vmatpush3.bf16.msra.mxu1 %v2325_v37 }
 0x151   :  { %743 = vmatprep.subr.bf16.mxu0 %v2263_v27  ;;  %1732 = vmatprep.subr.bf16.mxu1 %v2869_v57 }
 0x154   :  { %744 = vmatpush1.bf16.msra.mxu0 %v2283_v30  ;;  %1733 = vmatpush3.bf16.msra.mxu1 %v2343_v39 }
 0x155   :  { %745 = vmatprep.subr.bf16.mxu0 %v2292_v32  ;;  %1734 = vmatprep.subr.bf16.mxu1 %v2869_v57 }
 0x158   :  { %746 = vmatpush1.bf16.msra.mxu0 %v2309_v34  ;;  %1735 = vmatpush3.bf16.msra.mxu1 %v2354_v41 }
 0x159   :  { %747 = vmatprep.subr.bf16.mxu0 %v2318_v36  ;;  %1736 = vmatprep.subr.bf16.mxu1 %v2869_v57 }
 0x15c   :  { %748 = vmatpush1.bf16.msra.mxu0 %v2336_v38  ;;  %1737 = vmatpush3.bf16.msra.mxu1 %v2365_v42 }
 0x15d   :  { %843 = vmatprep.subr.bf16.mxu0 %v2168_v8  ;;  %1742 = vmatprep.subr.bf16.mxu1 %v2869_v57 }
 0x212   :  { %v657_v51 = vpop.f32.mrb[20].mxu0  ;;  %v698_v48 = vpop.f32.mrb[12].mxu1 }
 0x213   :  { %v704_v53 = vadd.f32 %v657_v51, %v2406_v54  ;;  %v659_v55 = vpop.f32.mrb[21].mxu0  ;;  %v1720_v62 = vpop.f32.mrb[13].mxu1  ;;  %v718_v2 = vadd.f32 %v2460_v47, %v698_v48 }
 0x214   :  { %v711_v4 = vadd.f32 %v659_v55, %v2408_v56  ;;  %v661_v11 = vpop.f32.mrb[22].mxu0  ;;  %v701_v49 = vpop.f32.mrb[14].mxu1 }
 0x215   :  { %v1551_v40 = vmul.f32 -1.442695, %v704_v53  ;;  %v662_v0 = vpop.f32.mrb[23].mxu0  ;;  %v1721_v50 = vpop.f32.mrb[15].mxu1 }
 0x216   :  { %v1552_v52 = vmul.f32 -1.442695, %v711_v4 }
 0x217   :  { %1959 = vpow2.f32 %v1551_v40 }
 0x218   :  { %1961 = vpow2.f32 %v1552_v52 }
 0x221   :  { %v1960_v17 = vpop.eup %1959 }
 0x222   :  { %v708_v58 = vadd.f32 1.0, %v1960_v17  ;;  %v1962_v25 = vpop.eup %1961 }
 0x223   :  { %v715_v6 = vadd.f32 1.0, %v1962_v25 }
 0x224   :  { %1963 = vrcp.f32 %v708_v58 }
 0x225   :  { %1965 = vrcp.f32 %v715_v6 }
 0x22e   :  { %v1964_v54 = vpop.eup %1963 }
 0x22f   :  { %v719_v31 = vmul.f32 %v1964_v54, %v718_v2  ;;  %v1966_v45 = vpop.eup %1965 }
 0x230   :  { %v722_v51 = vsub.f32 1.0, %v1966_v45  ;;  %v724_v62 = vmul.f32 %v1966_v45, %v2464_v35 }
 0x231   :  { %v720_v56 = vadd.f32 %v719_v31, %v2417_v63 }
 0x233   :  { %1967 = vtanh.f32 %v720_v56 }
 0x23d   :  { %v1968_v53 = vpop.eup %1967 }
 0x23e   :  { %v723_v55 = vmul.f32 %v1968_v53, %v722_v51 }
 0x240   :  { %v2508_v4 = vadd.f32 %v724_v62, %v723_v55 }
 0x242   :  { %v732_v11 = vpack.c.bf16 %v2508_v4, %v2508_v4 }
 0x244   :  { %766 = vmatmul.mubr.bf16.vlgmr.msra.gmra.mrb[24].mxu0 %v732_v11  ;;  %1739 = vmatmul.mubr.bf16.vlgmr.msra.gmra.mrb[16].mxu1 %v732_v11 }
 0x245   :  { %844 = vmatpush1.bf16.msra.mxu0 %v2174_v9  ;;  %1743 = vmatpush3.bf16.msra.mxu1 %v2219_v20 }
 0x246   :  { %845 = vmatprep.subr.bf16.mxu0 %v2180_v10  ;;  %1744 = vmatprep.subr.bf16.mxu1 %v2869_v57 }
 0x247   :  { %875 = vmatprep.mubr.bf16.mxu0 %v2870_v1  ;;  %1758 = vmatprep.mubr.msk.bf16.mxu1 %vm2105_vm1, %v2869_v57 }
 0x249   :  { %846 = vmatpush1.bf16.msra.mxu0 %v2191_v12  ;;  %1745 = vmatpush3.bf16.msra.mxu1 %v2244_v24 }
 0x24a   :  { %847 = vmatprep.subr.bf16.mxu0 %v2197_v13  ;;  %1746 = vmatprep.subr.bf16.mxu1 %v2869_v57 }
 0x24d   :  { %848 = vmatpush1.bf16.msra.mxu0 %v2208_v18  ;;  %1747 = vmatpush3.bf16.msra.mxu1 %v2270_v28 }
 0x24e   :  { %849 = vmatprep.subr.bf16.mxu0 %v2214_v19  ;;  %1748 = vmatprep.subr.bf16.mxu1 %v2869_v57 }
 0x251   :  { %850 = vmatpush1.bf16.msra.mxu0 %v2231_v22  ;;  %1749 = vmatpush3.bf16.msra.mxu1 %v2299_v33 }
 0x252   :  { %851 = vmatprep.subr.bf16.mxu0 %v2237_v23  ;;  %1750 = vmatprep.subr.bf16.mxu1 %v2869_v57 }
 0x255   :  { %852 = vmatpush1.bf16.msra.mxu0 %v2257_v26  ;;  %1751 = vmatpush3.bf16.msra.mxu1 %v2325_v37 }
 0x256   :  { %853 = vmatprep.subr.bf16.mxu0 %v2263_v27  ;;  %1752 = vmatprep.subr.bf16.mxu1 %v2869_v57 }
 0x259   :  { %854 = vmatpush1.bf16.msra.mxu0 %v2283_v30  ;;  %1753 = vmatpush3.bf16.msra.mxu1 %v2343_v39 }
 0x25a   :  { %855 = vmatprep.subr.bf16.mxu0 %v2292_v32  ;;  %1754 = vmatprep.subr.bf16.mxu1 %v2869_v57 }
 0x25d   :  { %856 = vmatpush1.bf16.msra.mxu0 %v2309_v34  ;;  %1755 = vmatpush3.bf16.msra.mxu1 %v2354_v41 }
 0x25e   :  { %857 = vmatprep.subr.bf16.mxu0 %v2318_v36  ;;  %1756 = vmatprep.subr.bf16.mxu1 %v2869_v57 }
 0x261   :  { %858 = vmatpush1.bf16.msra.mxu0 %v2336_v38  ;;  %1757 = vmatpush3.bf16.msra.mxu1 %v2365_v42 }
 0x262   :  { %953 = vmatprep.subr.bf16.mxu0 %v2168_v8  ;;  %1762 = vmatprep.subr.bf16.mxu1 %v2869_v57 }
 0x317   :  { %v767_v63 = vpop.f32.mrb[24].mxu0  ;;  %v808_v35 = vpop.f32.mrb[16].mxu1 }
 0x318   :  { %v814_v48 = vadd.f32 %v767_v63, %v2412_v59  ;;  %v769_v49 = vpop.f32.mrb[25].mxu0  ;;  %v1740_v40 = vpop.f32.mrb[17].mxu1  ;;  %v828_v45 = vadd.f32 %v2460_v47, %v808_v35 }
 0x319   :  { %v821_v0 = vadd.f32 %v769_v49, %v2414_v61  ;;  %v771_v50 = vpop.f32.mrb[26].mxu0  ;;  %v811_v52 = vpop.f32.mrb[18].mxu1 }
 0x31a   :  { %v1553_v17 = vmul.f32 -1.442695, %v814_v48  ;;  %v772_v58 = vpop.f32.mrb[27].mxu0  ;;  %v1741_v25 = vpop.f32.mrb[19].mxu1 }
 0x31b   :  { %v1554_v6 = vmul.f32 -1.442695, %v821_v0 }
 0x31c   :  { %1969 = vpow2.f32 %v1553_v17 }
 0x31d   :  { %1971 = vpow2.f32 %v1554_v6 }
 0x326   :  { %v1970_v2 = vpop.eup %1969 }
 0x327   :  { %v818_v54 = vadd.f32 1.0, %v1970_v2  ;;  %v1972_v31 = vpop.eup %1971 }
 0x328   :  { %v825_v56 = vadd.f32 1.0, %v1972_v31 }
 0x329   :  { %1973 = vrcp.f32 %v818_v54 }
 0x32a   :  { %1975 = vrcp.f32 %v825_v56 }
 0x333   :  { %v1974_v59 = vpop.eup %1973 }
 0x334   :  { %v829_v51 = vmul.f32 %v1974_v59, %v828_v45  ;;  %v1976_v53 = vpop.eup %1975 }
 0x335   :  { %v832_v55 = vsub.f32 1.0, %v1976_v53  ;;  %v834_v63 = vmul.f32 %v1976_v53, %v2508_v4 }
 0x336   :  { %v830_v61 = vadd.f32 %v829_v51, %v2427_v15 }
 0x338   :  { %1977 = vtanh.f32 %v830_v61 }
 0x342   :  { %v1978_v62 = vpop.eup %1977 }
 0x343   :  { %v833_v11 = vmul.f32 %v1978_v62, %v832_v55 }
 0x345   :  { %v2552_v48 = vadd.f32 %v834_v63, %v833_v11 }
 0x347   :  { %v842_v49 = vpack.c.bf16 %v2552_v48, %v2552_v48 }
 0x349   :  { %876 = vmatmul.mubr.bf16.vlgmr.msra.gmra.mrb[28].mxu0 %v842_v49  ;;  %1759 = vmatmul.mubr.bf16.vlgmr.msra.gmra.mrb[20].mxu1 %v842_v49 }
 0x34a   :  { %954 = vmatpush1.bf16.msra.mxu0 %v2174_v9  ;;  %1763 = vmatpush3.bf16.msra.mxu1 %v2219_v20 }
 0x34b   :  { %955 = vmatprep.subr.bf16.mxu0 %v2180_v10  ;;  %1764 = vmatprep.subr.bf16.mxu1 %v2869_v57 }
 0x34c   :  { %985 = vmatprep.mubr.bf16.mxu0 %v2870_v1  ;;  %1778 = vmatprep.mubr.msk.bf16.mxu1 %vm2105_vm1, %v2869_v57 }
 0x34e   :  { %956 = vmatpush1.bf16.msra.mxu0 %v2191_v12  ;;  %1765 = vmatpush3.bf16.msra.mxu1 %v2244_v24 }
 0x34f   :  { %957 = vmatprep.subr.bf16.mxu0 %v2197_v13  ;;  %1766 = vmatprep.subr.bf16.mxu1 %v2869_v57 }
 0x352   :  { %958 = vmatpush1.bf16.msra.mxu0 %v2208_v18  ;;  %1767 = vmatpush3.bf16.msra.mxu1 %v2270_v28 }
 0x353   :  { %959 = vmatprep.subr.bf16.mxu0 %v2214_v19  ;;  %1768 = vmatprep.subr.bf16.mxu1 %v2869_v57 }
 0x356   :  { %960 = vmatpush1.bf16.msra.mxu0 %v2231_v22  ;;  %1769 = vmatpush3.bf16.msra.mxu1 %v2299_v33 }
 0x357   :  { %961 = vmatprep.subr.bf16.mxu0 %v2237_v23  ;;  %1770 = vmatprep.subr.bf16.mxu1 %v2869_v57 }
 0x35a   :  { %962 = vmatpush1.bf16.msra.mxu0 %v2257_v26  ;;  %1771 = vmatpush3.bf16.msra.mxu1 %v2325_v37 }
 0x35b   :  { %963 = vmatprep.subr.bf16.mxu0 %v2263_v27  ;;  %1772 = vmatprep.subr.bf16.mxu1 %v2869_v57 }
 0x35e   :  { %964 = vmatpush1.bf16.msra.mxu0 %v2283_v30  ;;  %1773 = vmatpush3.bf16.msra.mxu1 %v2343_v39 }
 0x35f   :  { %965 = vmatprep.subr.bf16.mxu0 %v2292_v32  ;;  %1774 = vmatprep.subr.bf16.mxu1 %v2869_v57 }
 0x362   :  { %966 = vmatpush1.bf16.msra.mxu0 %v2309_v34  ;;  %1775 = vmatpush3.bf16.msra.mxu1 %v2354_v41 }
 0x363   :  { %967 = vmatprep.subr.bf16.mxu0 %v2318_v36  ;;  %1776 = vmatprep.subr.bf16.mxu1 %v2869_v57 }
 0x366   :  { %968 = vmatpush1.bf16.msra.mxu0 %v2336_v38  ;;  %1777 = vmatpush3.bf16.msra.mxu1 %v2365_v42 }
 0x367   :  { %1063 = vmatprep.subr.bf16.mxu0 %v2168_v8  ;;  %1782 = vmatprep.subr.bf16.mxu1 %v2869_v57 }
 0x41c   :  { %v877_v15 = vpop.f32.mrb[28].mxu0  ;;  %v918_v4 = vpop.f32.mrb[20].mxu1 }
 0x41d   :  { %v924_v35 = vadd.f32 %v877_v15, %v2419_v3  ;;  %v879_v40 = vpop.f32.mrb[29].mxu0  ;;  %v1760_v0 = vpop.f32.mrb[21].mxu1  ;;  %v938_v59 = vadd.f32 %v2460_v47, %v918_v4 }
 0x41e   :  { %v931_v50 = vadd.f32 %v879_v40, %v2421_v5  ;;  %v881_v52 = vpop.f32.mrb[30].mxu0  ;;  %v921_v17 = vpop.f32.mrb[22].mxu1 }
 0x41f   :  { %v1555_v58 = vmul.f32 -1.442695, %v924_v35  ;;  %v882_v25 = vpop.f32.mrb[31].mxu0  ;;  %v1761_v6 = vpop.f32.mrb[23].mxu1 }
 0x420   :  { %v1556_v2 = vmul.f32 -1.442695, %v931_v50 }
 0x421   :  { %1979 = vpow2.f32 %v1555_v58 }
 0x422   :  { %1981 = vpow2.f32 %v1556_v2 }
 0x42b   :  { %v1980_v54 = vpop.eup %1979 }
 0x42c   :  { %v928_v31 = vadd.f32 1.0, %v1980_v54  ;;  %v1982_v56 = vpop.eup %1981 }
 0x42d   :  { %v935_v45 = vadd.f32 1.0, %v1982_v56 }
 0x42e   :  { %1983 = vrcp.f32 %v928_v31 }
 0x42f   :  { %1985 = vrcp.f32 %v935_v45 }
 0x438   :  { %v1984_v3 = vpop.eup %1983 }
 0x439   :  { %v939_v51 = vmul.f32 %v1984_v3, %v938_v59  ;;  %v1986_v61 = vpop.eup %1985 }
 0x43a   :  { %v942_v53 = vsub.f32 1.0, %v1986_v61  ;;  %v944_v11 = vmul.f32 %v1986_v61, %v2552_v48 }
 0x43b   :  { %v940_v5 = vadd.f32 %v939_v51, %v2424_v7  ;;  %v2647_v51 = vld [vmem:[%s2856_s3] ss:$12 sps:$4 sm:$0xff]  }
 0x43d   :  { %1987 = vtanh.f32 %v940_v5  ;;  %v2664_v5 = vld [vmem:[%s2856_s3 + $0x18] ss:$12 sps:$4 sm:$0xff]  }
 0x447   :  { %v1988_v55 = vpop.eup %1987 }
 0x448   :  { %v943_v62 = vmul.f32 %v1988_v55, %v942_v53 }
 0x44a   :  { %v2596_v63 = vadd.f32 %v944_v11, %v943_v62 }
 0x44c   :  { %v952_v49 = vpack.c.bf16 %v2596_v63, %v2596_v63 }
 0x44e   :  { %986 = vmatmul.mubr.bf16.vlgmr.msra.gmra.mrb[32].mxu0 %v952_v49  ;;  %1779 = vmatmul.mubr.bf16.vlgmr.msra.gmra.mrb[24].mxu1 %v952_v49 }
 0x44f   :  { %1064 = vmatpush1.bf16.msra.mxu0 %v2174_v9  ;;  %1783 = vmatpush3.bf16.msra.mxu1 %v2219_v20 }
 0x450   :  { %1065 = vmatprep.subr.bf16.mxu0 %v2180_v10  ;;  %1784 = vmatprep.subr.bf16.mxu1 %v2869_v57 }
 0x451   :  { %1095 = vmatprep.mubr.bf16.mxu0 %v2870_v1  ;;  %1798 = vmatprep.mubr.msk.bf16.mxu1 %vm2105_vm1, %v2869_v57 }
 0x453   :  { %1066 = vmatpush1.bf16.msra.mxu0 %v2191_v12  ;;  %1785 = vmatpush3.bf16.msra.mxu1 %v2244_v24 }
 0x454   :  { %1067 = vmatprep.subr.bf16.mxu0 %v2197_v13  ;;  %1786 = vmatprep.subr.bf16.mxu1 %v2869_v57 }
 0x457   :  { %1068 = vmatpush1.bf16.msra.mxu0 %v2208_v18  ;;  %1787 = vmatpush3.bf16.msra.mxu1 %v2270_v28 }
 0x458   :  { %1069 = vmatprep.subr.bf16.mxu0 %v2214_v19  ;;  %1788 = vmatprep.subr.bf16.mxu1 %v2869_v57 }
 0x45b   :  { %1070 = vmatpush1.bf16.msra.mxu0 %v2231_v22  ;;  %1789 = vmatpush3.bf16.msra.mxu1 %v2299_v33 }
 0x45c   :  { %1071 = vmatprep.subr.bf16.mxu0 %v2237_v23  ;;  %1790 = vmatprep.subr.bf16.mxu1 %v2869_v57 }
 0x45f   :  { %1072 = vmatpush1.bf16.msra.mxu0 %v2257_v26  ;;  %1791 = vmatpush3.bf16.msra.mxu1 %v2325_v37 }
 0x460   :  { %1073 = vmatprep.subr.bf16.mxu0 %v2263_v27  ;;  %1792 = vmatprep.subr.bf16.mxu1 %v2869_v57 }
 0x463   :  { %1074 = vmatpush1.bf16.msra.mxu0 %v2283_v30  ;;  %1793 = vmatpush3.bf16.msra.mxu1 %v2343_v39 }
 0x464   :  { %1075 = vmatprep.subr.bf16.mxu0 %v2292_v32  ;;  %1794 = vmatprep.subr.bf16.mxu1 %v2869_v57 }
 0x467   :  { %1076 = vmatpush1.bf16.msra.mxu0 %v2309_v34  ;;  %1795 = vmatpush3.bf16.msra.mxu1 %v2354_v41 }
 0x468   :  { %1077 = vmatprep.subr.bf16.mxu0 %v2318_v36  ;;  %1796 = vmatprep.subr.bf16.mxu1 %v2869_v57 }
 0x46b   :  { %1078 = vmatpush1.bf16.msra.mxu0 %v2336_v38  ;;  %1797 = vmatpush3.bf16.msra.mxu1 %v2365_v42 }
 0x46c   :  { %1173 = vmatprep.subr.bf16.mxu0 %v2168_v8  ;;  %1802 = vmatprep.subr.bf16.mxu1 %v2869_v57 }
 0x521   :  { %v987_v9 = vpop.f32.mrb[32].mxu0  ;;  %v1028_v10 = vpop.f32.mrb[24].mxu1 }
 0x522   :  { %v1034_v12 = vadd.f32 %v987_v9, %v2429_v16  ;;  %v989_v13 = vpop.f32.mrb[33].mxu0  ;;  %v1780_v7 = vpop.f32.mrb[25].mxu1  ;;  %v1048_v25 = vadd.f32 %v2460_v47, %v1028_v10 }
 0x523   :  { %v1041_v48 = vadd.f32 %v989_v13, %v2431_v21  ;;  %v991_v15 = vpop.f32.mrb[34].mxu0  ;;  %v1031_v4 = vpop.f32.mrb[26].mxu1 }
 0x524   :  { %v1557_v35 = vmul.f32 -1.442695, %v1034_v12  ;;  %v992_v40 = vpop.f32.mrb[35].mxu0  ;;  %v1781_v0 = vpop.f32.mrb[27].mxu1  ;;  %v2040_v15 = vld [vmem:[%s2856_s3 + $0x30] ss:$12 sps:$4 sm:$0xff]  }
 0x525   :  { %v1558_v50 = vmul.f32 -1.442695, %v1041_v48  ;;  %v2039_v48 = vld [vmem:[%s2856_s3 + $0x20] ss:$12 sps:$4 sm:$0xff]   ;;  %v2044_v40 = vld [vmem:[%s2856_s3 + $0x50] ss:$12 sps:$4 sm:$0xff]  }
 0x526   :  { %1989 = vpow2.f32 %v1557_v35  ;;  %v2042_v4 = vld [vmem:[%s2856_s3 + $0x4c] ss:$12 sps:$4 sm:$0xff]   ;;  %v2043_v35 = vld [vmem:[%s2856_s3 + $0x48] ss:$12 sps:$4 sm:$0xff]   ;;  %v2045_v0 = vld [vmem:[%s2856_s3 + $0x64] ss:$12 sps:$4 sm:$0xff]  }
 0x527   :  { %1991 = vpow2.f32 %v1558_v50  ;;  %v2046_v50 = vld [vmem:[%s2856_s3 + $0x60] ss:$12 sps:$4 sm:$0xff]  }
 0x530   :  { %v1990_v52 = vpop.eup %1989 }
 0x531   :  { %v1038_v8 = vadd.f32 1.0, %v1990_v52  ;;  %v1992_v17 = vpop.eup %1991  ;;  %v2047_v52 = vld [vmem:[%s2856_s3 + $0x7c] ss:$12 sps:$4 sm:$0xff]  }
 0x532   :  { %v1045_v58 = vadd.f32 1.0, %v1992_v17  ;;  %v2049_v17 = vld [vmem:[%s2856_s3 + $0x94] ss:$12 sps:$4 sm:$0xff]  }
 0x533   :  { %1993 = vrcp.f32 %v1038_v8  ;;  %v2048_v8 = vld [vmem:[%s2856_s3 + $0x78] ss:$12 sps:$4 sm:$0xff]  }
 0x534   :  { %1995 = vrcp.f32 %v1045_v58  ;;  %v2051_v58 = vld [vmem:[%s2856_s3 + $0xac] ss:$12 sps:$4 sm:$0xff]  }
 0x53d   :  { %v1994_v16 = vpop.eup %1993 }
 0x53e   :  { %v1049_v6 = vmul.f32 %v1994_v16, %v1048_v25  ;;  %v1996_v2 = vpop.eup %1995 }
 0x53f   :  { %v1052_v54 = vsub.f32 1.0, %v1996_v2  ;;  %v1054_v45 = vmul.f32 %v1996_v2, %v2596_v63  ;;  %v2871_v2 = vld [vmem:[#allocation11_spill] sm:$0xff] }
 0x540   :  { %v1050_v21 = vadd.f32 %v1049_v6, %v2437_v43  ;;  %v2654_v43 = vld [vmem:[%s2856_s3 + $0x1c] ss:$12 sps:$4 sm:$0xff]  }
 0x542   :  { %1997 = vtanh.f32 %v1050_v21 }
 0x54c   :  { %v1998_v31 = vpop.eup %1997 }
 0x54d   :  { %v1053_v56 = vmul.f32 %v1998_v31, %v1052_v54 }
 0x54f   :  { %v2640_v59 = vadd.f32 %v1054_v45, %v1053_v56 }
 0x551   :  { %v1062_v3 = vpack.c.bf16 %v2640_v59, %v2640_v59 }
 0x553   :  { %1096 = vmatmul.mubr.bf16.vlgmr.msra.gmra.mrb[36].mxu0 %v1062_v3  ;;  %1799 = vmatmul.mubr.bf16.vlgmr.msra.gmra.mrb[28].mxu1 %v1062_v3 }
 0x554   :  { %1174 = vmatpush1.bf16.msra.mxu0 %v2647_v51  ;;  %1803 = vmatpush3.bf16.msra.mxu1 %v2219_v20  ;;  %v2671_v20 = vld [vmem:[%s2856_s3 + $0x34] ss:$12 sps:$4 sm:$0xff]  }
 0x555   :  { %1175 = vmatprep.subr.bf16.mxu0 %v2654_v43  ;;  %1804 = vmatprep.subr.bf16.mxu1 %v2869_v57 }
 0x556   :  { %1205 = vmatprep.mubr.bf16.mxu0 %v2870_v1  ;;  %1818 = vmatprep.mubr.msk.bf16.mxu1 %vm2105_vm1, %v2869_v57 }
 0x558   :  { %1176 = vmatpush1.bf16.msra.mxu0 %v2664_v5  ;;  %1805 = vmatpush3.bf16.msra.mxu1 %v2244_v24 }
 0x559   :  { %1177 = vmatprep.subr.bf16.mxu0 %v2671_v20  ;;  %1806 = vmatprep.subr.bf16.mxu1 %v2869_v57 }
 0x55c   :  { %1178 = vmatpush1.bf16.msra.mxu0 %v2208_v18  ;;  %1807 = vmatpush3.bf16.msra.mxu1 %v2270_v28  ;;  %v2037_v18 = vld [vmem:[%s2856_s3 + $0x4] ss:$12 sps:$4 sm:$0xff]  }
 0x55d   :  { %1179 = vmatprep.subr.bf16.mxu0 %v2214_v19  ;;  %1808 = vmatprep.subr.bf16.mxu1 %v2869_v57 }
 0x560   :  { %1180 = vmatpush1.bf16.msra.mxu0 %v2231_v22  ;;  %1809 = vmatpush3.bf16.msra.mxu1 %v2299_v33 }
 0x561   :  { %1181 = vmatprep.subr.bf16.mxu0 %v2237_v23  ;;  %1810 = vmatprep.subr.bf16.mxu1 %v2869_v57 }
 0x564   :  { %1182 = vmatpush1.bf16.msra.mxu0 %v2257_v26  ;;  %1811 = vmatpush3.bf16.msra.mxu1 %v2325_v37 }
 0x565   :  { %1183 = vmatprep.subr.bf16.mxu0 %v2263_v27  ;;  %1812 = vmatprep.subr.bf16.mxu1 %v2869_v57 }
 0x568   :  { %1184 = vmatpush1.bf16.msra.mxu0 %v2283_v30  ;;  %1813 = vmatpush3.bf16.msra.mxu1 %v2343_v39 }
 0x569   :  { %1185 = vmatprep.subr.bf16.mxu0 %v2292_v32  ;;  %1814 = vmatprep.subr.bf16.mxu1 %v2869_v57 }
 0x56c   :  { %1186 = vmatpush1.bf16.msra.mxu0 %v2309_v34  ;;  %1815 = vmatpush3.bf16.msra.mxu1 %v2354_v41 }
 0x56d   :  { %1187 = vmatprep.subr.bf16.mxu0 %v2318_v36  ;;  %1816 = vmatprep.subr.bf16.mxu1 %v2869_v57 }
 0x570   :  { %1188 = vmatpush1.bf16.msra.mxu0 %v2336_v38  ;;  %1817 = vmatpush3.bf16.msra.mxu1 %v2365_v42 }
 0x571   :  { %1283 = vmatprep.subr.bf16.mxu0 %v2037_v18  ;;  %1822 = vmatprep.subr.bf16.mxu1 %v2869_v57 }
 0x626   :  { %v1097_v19 = vpop.f32.mrb[36].mxu0  ;;  %v1138_v22 = vpop.f32.mrb[28].mxu1 }
 0x627   :  { %v1144_v23 = vadd.f32 %v1097_v19, %v2439_v44  ;;  %v1099_v24 = vpop.f32.mrb[37].mxu0  ;;  %v1800_v26 = vpop.f32.mrb[29].mxu1  ;;  %v1158_v62 = vadd.f32 %v2460_v47, %v1138_v22  ;;  %v2872_v22 = vld [vmem:[#allocation10_spill] sm:$0xff] }
 0x628   :  { %v1151_v27 = vadd.f32 %v1099_v24, %v2441_v46  ;;  %v1101_v28 = vpop.f32.mrb[38].mxu0  ;;  %v1141_v30 = vpop.f32.mrb[30].mxu1 }
 0x629   :  { %v1559_v32 = vmul.f32 -1.442695, %v1144_v23  ;;  %v1102_v33 = vpop.f32.mrb[39].mxu0  ;;  %v1801_v34 = vpop.f32.mrb[31].mxu1 }
 0x62a   :  { %v1560_v36 = vmul.f32 -1.442695, %v1151_v27  ;;  %v1386_v34 = vld [vmem:[%s2858_s5] sm:$0xff] }
 0x62b   :  { %1999 = vpow2.f32 %v1559_v32 }
 0x62c   :  { %2001 = vpow2.f32 %v1560_v36  ;;  %v1387_v36 = vld [vmem:[%s2858_s5 + $0x8] sm:$0xff] }
 0x635   :  { %v2000_v38 = vpop.eup %1999 }
 0x636   :  { %v1148_v61 = vadd.f32 1.0, %v2000_v38  ;;  %v2002_v53 = vpop.eup %2001  ;;  %v1886_v38 = vpack.c.bf16 %v1387_v36, %v1386_v34 }
 0x637   :  { %v1155_v55 = vadd.f32 1.0, %v2002_v53  ;;  %v1388_v53 = vld [vmem:[%s2858_s5 + $0x10] sm:$0xff] }
 0x638   :  { %2003 = vrcp.f32 %v1148_v61  ;;  %v2107_v61 = vmov 0.0|0.0  }
 0x639   :  { %2005 = vrcp.f32 %v1155_v55 }
 0x642   :  { %v2004_v44 = vpop.eup %2003 }
 0x643   :  { %v1159_v11 = vmul.f32 %v2004_v44, %v1158_v62  ;;  %v2006_v63 = vpop.eup %2005  ;;  %v1390_v62 = vld [vmem:[%s2858_s5 + $0x20] sm:$0xff]  ;;  %v1391_v44 = vld [vmem:[%s2858_s5 + $0x28] sm:$0xff] }
 0x644   :  { %v1162_v49 = vsub.f32 1.0, %v2006_v63  ;;  %v1164_v12 = vmul.f32 %v2006_v63, %v2640_v59  ;;  %v1393_v63 = vld [vmem:[%s2858_s5 + $0x38] sm:$0xff] }
 0x645   :  { %v1160_v46 = vadd.f32 %v1159_v11, %v2434_v29  ;;  %v2038_v29 = vld [vmem:[%s2856_s3 + $0x8] ss:$12 sps:$4 sm:$0xff]   ;;  %v1892_v11 = vpack.c.bf16 %v1391_v44, %v1390_v62 }
 0x647   :  { %2007 = vtanh.f32 %v1160_v46  ;;  %v1392_v46 = vld [vmem:[%s2858_s5 + $0x30] sm:$0xff] }
 0x651   :  { %v2008_v9 = vpop.eup %2007 }
 0x652   :  { %v1163_v10 = vmul.f32 %v2008_v9, %v1162_v49  ;;  %v1895_v49 = vpack.c.bf16 %v1393_v63, %v1392_v46  ;;  %v1394_v9 = vld [vmem:[%s2858_s5 + $0x40] sm:$0xff] }
 0x654   :  { %v2706_v13 = vadd.f32 %v1164_v12, %v1163_v10  ;;  %v1395_v10 = vld [vmem:[%s2858_s5 + $0x48] sm:$0xff] }
 0x655   :  { %v1898_v12 = vpack.c.bf16 %v1395_v10, %v1394_v9 }
 0x656   :  { %v1172_v7 = vpack.c.bf16 %v2706_v13, %v2706_v13 }
 0x658   :  { %1206 = vmatmul.mubr.bf16.vlgmr.msra.gmra.mrb[40].mxu0 %v1172_v7  ;;  %1819 = vmatmul.mubr.bf16.vlgmr.msra.gmra.mrb[32].mxu1 %v1172_v7  ;;  %v1397_v7 = vld [vmem:[%s2858_s5 + $0x58] sm:$0xff] }
 0x659   :  { %1284 = vmatpush1.bf16.msra.mxu0 %v2647_v51  ;;  %1823 = vmatpush3.bf16.msra.mxu1 %v2038_v29 }
 0x65a   :  { %1285 = vmatprep.subr.bf16.mxu0 %v2654_v43  ;;  %1824 = vmatprep.subr.bf16.mxu1 %v2869_v57 }
 0x65b   :  { %1315 = vmatprep.mubr.bf16.mxu0 %v2870_v1  ;;  %1838 = vmatprep.mubr.msk.bf16.mxu1 %vm2105_vm1, %v2869_v57  ;;  %v2041_v1 = vld [vmem:[%s2856_s3 + $0x38] ss:$12 sps:$4 sm:$0xff]  }
 0x65d   :  { %1286 = vmatpush1.bf16.msra.mxu0 %v2664_v5  ;;  %1825 = vmatpush3.bf16.msra.mxu1 %v2039_v48  ;;  %v1398_v48 = vld [vmem:[%s2858_s5 + $0x60] sm:$0xff] }
 0x65e   :  { %1287 = vmatprep.subr.bf16.mxu0 %v2671_v20  ;;  %1826 = vmatprep.subr.bf16.mxu1 %v2869_v57 }
 0x661   :  { %1288 = vmatpush1.bf16.msra.mxu0 %v2040_v15  ;;  %1827 = vmatpush3.bf16.msra.mxu1 %v2041_v1  ;;  %v1399_v15 = vld [vmem:[%s2858_s5 + $0x68] sm:$0xff] }
 0x662   :  { %1289 = vmatprep.subr.bf16.mxu0 %v2042_v4  ;;  %1828 = vmatprep.subr.bf16.mxu1 %v2869_v57  ;;  %v1904_v1 = vpack.c.bf16 %v1399_v15, %v1398_v48  ;;  %v1400_v4 = vld [vmem:[%s2858_s5 + $0x70] sm:$0xff] }
 0x665   :  { %1290 = vmatpush1.bf16.msra.mxu0 %v2043_v35  ;;  %1829 = vmatpush3.bf16.msra.mxu1 %v2044_v40  ;;  %v1401_v35 = vld [vmem:[%s2858_s5 + $0x78] sm:$0xff] }
 0x666   :  { %1291 = vmatprep.subr.bf16.mxu0 %v2045_v0  ;;  %1830 = vmatprep.subr.bf16.mxu1 %v2869_v57  ;;  %v1907_v40 = vpack.c.bf16 %v1401_v35, %v1400_v4 }
 0x669   :  { %1292 = vmatpush1.bf16.msra.mxu0 %v2046_v50  ;;  %1831 = vmatpush3.bf16.msra.mxu1 %v2325_v37  ;;  %v2050_v37 = vld [vmem:[%s2856_s3 + $0x90] ss:$12 sps:$4 sm:$0xff]  }
 0x66a   :  { %1293 = vmatprep.subr.bf16.mxu0 %v2047_v52  ;;  %1832 = vmatprep.subr.bf16.mxu1 %v2869_v57  ;;  %v2873_v52 = vld [vmem:[#allocation12_spill] sm:$0xff] }
 0x66d   :  { %1294 = vmatpush1.bf16.msra.mxu0 %v2048_v8  ;;  %1833 = vmatpush3.bf16.msra.mxu1 %v2343_v39  ;;  %v2052_v39 = vld [vmem:[%s2856_s3 + $0xa8] ss:$12 sps:$4 sm:$0xff]  }
 0x66e   :  { %1295 = vmatprep.subr.bf16.mxu0 %v2049_v17  ;;  %1834 = vmatprep.subr.bf16.mxu1 %v2869_v57 }
 0x671   :  { %1296 = vmatpush1.bf16.msra.mxu0 %v2050_v37  ;;  %1835 = vmatpush3.bf16.msra.mxu1 %v2354_v41 }
 0x672   :  { %1297 = vmatprep.subr.bf16.mxu0 %v2051_v58  ;;  %1836 = vmatprep.subr.bf16.mxu1 %v2869_v57 }
 0x675   :  { %1298 = vmatpush1.bf16.msra.mxu0 %v2052_v39  ;;  %1837 = vmatpush3.bf16.msra.mxu1 %v2365_v42 }
 0x676   :  { %1885 = vmatprep.subr.bf16.mxu0 %v2107_v61 }
 0x72b   :  { %v1207_v25 = vpop.f32.mrb[40].mxu0  ;;  %v1248_v16 = vpop.f32.mrb[32].mxu1 }
 0x72c   :  { %v1254_v6 = vadd.f32 %v1207_v25, %v2449_v60  ;;  %v1209_v21 = vpop.f32.mrb[41].mxu0  ;;  %v1820_v41 = vpop.f32.mrb[33].mxu1  ;;  %v1268_v18 = vadd.f32 %v2460_v47, %v1248_v16 }
 0x72d   :  { %v1261_v54 = vadd.f32 %v1209_v21, %v2871_v2  ;;  %v1211_v31 = vpop.f32.mrb[42].mxu0  ;;  %v1251_v56 = vpop.f32.mrb[34].mxu1 }
 0x72e   :  { %v1561_v45 = vmul.f32 -1.442695, %v1254_v6  ;;  %v1212_v59 = vpop.f32.mrb[43].mxu0  ;;  %v1821_v3 = vpop.f32.mrb[35].mxu1 }
 0x72f   :  { %v1562_v51 = vmul.f32 -1.442695, %v1261_v54 }
 0x730   :  { %2009 = vpow2.f32 %v1561_v45 }
 0x731   :  { %2011 = vpow2.f32 %v1562_v51  ;;  %v2874_v51 = vld [vmem:[#allocation9_spill] sm:$0xff] }
 0x73a   :  { %v2010_v43 = vpop.eup %2009 }
 0x73b   :  { %v1258_v5 = vadd.f32 1.0, %v2010_v43  ;;  %v2012_v42 = vpop.eup %2011 }
 0x73c   :  { %v1265_v20 = vadd.f32 1.0, %v2012_v42 }
 0x73d   :  { %2013 = vrcp.f32 %v1258_v5 }
 0x73e   :  { %2015 = vrcp.f32 %v1265_v20 }
 0x747   :  { %v2014_v60 = vpop.eup %2013 }
 0x748   :  { %v1269_v19 = vmul.f32 %v2014_v60, %v1268_v18  ;;  %v2016_v24 = vpop.eup %2015 }
 0x749   :  { %v1272_v26 = vsub.f32 1.0, %v2016_v24  ;;  %v1274_v30 = vmul.f32 %v2016_v24, %v2706_v13  ;;  %v1396_v13 = vld [vmem:[%s2858_s5 + $0x50] sm:$0xff] }
 0x74a   :  { %v1270_v23 = vadd.f32 %v1269_v19, %v2872_v22  ;;  %v1901_v29 = vpack.c.bf16 %v1397_v7, %v1396_v13  ;;  %v1565_v19 = vld [vmem:[%s2859_s6] ss:$0 sm:$0xff] }
 0x74c   :  { %2017 = vtanh.f32 %v1270_v23 }
 0x756   :  { %v2018_v27 = vpop.eup %2017 }
 0x757   :  { %v1273_v28 = vmul.f32 %v2018_v27, %v1272_v26 }
 0x759   :  { %v2778_v32 = vadd.f32 %v1274_v30, %v1273_v28 }
 0x75b   :  { %v1282_v33 = vpack.c.bf16 %v2778_v32, %v2778_v32 }
 0x75d   :  { %1316 = vmatmul.mubr.bf16.vlgmr.msra.gmra.mrb[44].mxu0 %v1282_v33  ;;  %1839 = vmatmul.mubr.bf16.vlgmr.msra.gmra.mrb[36].mxu1 %v1282_v33 }
 0x75e   :  { %1874 = vmatprep.mubr.msk.f32.mxu0 %vm2105_vm1, %v2869_v57  ;;  %1887 = vmatpush3.bf16.msra.mxu0 %v1886_v38  ;;  %v1389_v57 = vld [vmem:[%s2858_s5 + $0x18] sm:$0xff] }
 0x75f   :  { %1888 = vmatprep.subr.bf16.mxu0 %v2107_v61  ;;  %v1889_v55 = vpack.c.bf16 %v1389_v57, %v1388_v53 }
 0x762   :  { %1890 = vmatpush3.bf16.msra.mxu0 %v1889_v55 }
 0x763   :  { %1891 = vmatprep.subr.bf16.mxu0 %v2107_v61 }
 0x766   :  { %1893 = vmatpush3.bf16.msra.mxu0 %v1892_v11 }
 0x767   :  { %1894 = vmatprep.subr.bf16.mxu0 %v2107_v61 }
 0x76a   :  { %1896 = vmatpush3.bf16.msra.mxu0 %v1895_v49 }
 0x76b   :  { %1897 = vmatprep.subr.bf16.mxu0 %v2107_v61 }
 0x76e   :  { %1899 = vmatpush3.bf16.msra.mxu0 %v1898_v12 }
 0x76f   :  { %1900 = vmatprep.subr.bf16.mxu0 %v2107_v61 }
 0x772   :  { %1902 = vmatpush3.bf16.msra.mxu0 %v1901_v29 }
 0x773   :  { %1903 = vmatprep.subr.bf16.mxu0 %v2107_v61 }
 0x776   :  { %1905 = vmatpush3.bf16.msra.mxu0 %v1904_v1 }
 0x777   :  { %1906 = vmatprep.subr.bf16.mxu0 %v2107_v61 }
 0x77a   :  { %1908 = vmatpush3.bf16.msra.mxu0 %v1907_v40 }
 0x830   :  { %v1317_v0 = vpop.f32.mrb[44].mxu0  ;;  %v1358_v50 = vpop.f32.mrb[36].mxu1 }
 0x831   :  { %v1364_v8 = vadd.f32 %v1317_v0, %v2873_v52  ;;  %v1319_v17 = vpop.f32.mrb[45].mxu0  ;;  %v1840_v37 = vpop.f32.mrb[37].mxu1  ;;  %v1378_v45 = vadd.f32 %v2460_v47, %v1358_v50 }
 0x832   :  { %v1371_v58 = vadd.f32 %v1319_v17, %v2455_v14  ;;  %v1321_v39 = vpop.f32.mrb[46].mxu0  ;;  %v1361_v25 = vpop.f32.mrb[38].mxu1 }
 0x833   :  { %v1563_v16 = vmul.f32 -1.442695, %v1364_v8  ;;  %v1322_v6 = vpop.f32.mrb[47].mxu0  ;;  %v1841_v21 = vpop.f32.mrb[39].mxu1 }
 0x834   :  { %v1564_v41 = vmul.f32 -1.442695, %v1371_v58 }
 0x835   :  { %2019 = vpow2.f32 %v1563_v16 }
 0x836   :  { %2021 = vpow2.f32 %v1564_v41 }
 0x83f   :  { %v2020_v2 = vpop.eup %2019 }
 0x840   :  { %v1368_v54 = vadd.f32 1.0, %v2020_v2  ;;  %v2022_v31 = vpop.eup %2021 }
 0x841   :  { %v1375_v56 = vadd.f32 1.0, %v2022_v31 }
 0x842   :  { %2023 = vrcp.f32 %v1368_v54 }
 0x843   :  { %2025 = vrcp.f32 %v1375_v56 }
 0x84c   :  { %v2024_v59 = vpop.eup %2023 }
 0x84d   :  { %v1379_v3 = vmul.f32 %v2024_v59, %v1378_v45  ;;  %v2026_v43 = vpop.eup %2025 }
 0x84e   :  { %v1382_v5 = vsub.f32 1.0, %v2026_v43  ;;  %v1384_v18 = vmul.f32 %v2026_v43, %v2778_v32 }
 0x84f   :  { %v1380_v14 = vadd.f32 %v1379_v3, %v2874_v51 }
 0x851   :  { %2027 = vtanh.f32 %v1380_v14 }
 0x85b   :  { %v2028_v42 = vpop.eup %2027 }
 0x85c   :  { %v1383_v20 = vmul.f32 %v2028_v42, %v1382_v5 }
 0x85e   :  { %v1385_v60 = vadd.f32 %v1384_v18, %v1383_v20 }
 0x860   :  { %1875 = vmatmul.mubr.f32.vlgmr.msra.gmra.mrb[48].mxu0 %v1385_v60 }
 0x933   :  { %v1475_v22 = vpop.f32.mrb[48].mxu0 }
 0x934   :  { %v1476_v47 = vadd.f32 %v1565_v19, %v1475_v22  ;;  %v1876_v23 = vpop.f32.mrb[49].mxu0 }
 0x936   :  { %v1566_v24 = vmul.f32 -1.442695, %v1476_v47 }
 0x938   :  { %2029 = vpow2.f32 %v1566_v24 }
 0x942   :  { %v2030_v26 = vpop.eup %2029 }
 0x943   :  { %v1482_v27 = vadd.f32 1.0, %v2030_v26 }
 0x945   :  { %2031 = vrcp.f32 %v1482_v27 }
 0x94f   :  { %v2032_v28 = vpop.eup %2031 }
 0x950   :  { %1485 = vst.msk [vmem:[#allocation6] sm:$0xff] %vm73_vm0, %v2032_v28 }
 0x951   :  { %2086 = shalt.err (!%p2083_p12)
}
 0x952   :  { %s2087_s27 = scalar_lea.hbm %s2860_s7, 128 }
 0x953   :  { %p2088_p13 = scmp.ne.s32.totalorder %s2860_s7, %s2087_s27  ;;  %p2091_p0 = scmp.lt.u32.totalorder %s2087_s27, %s2860_s7 }
 0x955   :  { %p2093_p1 = pnand %p2091_p0, %p2088_p13 }
 0x957   :  { %2096 = shalt.err (!%p2093_p1)
}
 0x958   :  { %1495 = dma.vmem_to_hbm [thread:$0]  %s1493_s24, 128, %s2860_s7, [#allocation5]  }
 0x959   :  { %2099 = dma.done.wait [#allocation5], 128  }
 0x95a   :  { %2100 = vsyncadd [#allocation5], 4294967168 }
 0x95b   :  { %1499 = vsyncpa [#allocation4], 1 }
 0x95c   :  { %1500 = vsyncpa [#allocation5], 1 }

</bundles_post_ra>
